<compile_context>
chip_gen: v6e
topology: v6e:2x2x1
jax: 0.10.0
libtpu: 0.0.40
codegen_flags: <defaults>
</compile_context>

<pallas_src>
import functools

import jax
import jax.numpy as jnp
from jax.experimental import pallas as pl
from jax.experimental.pallas import tpu as pltpu

# Tap order (dy outer, dx inner) matches w.reshape(9*Cin, Cout) row ordering
# of a [3,3,Cin,Cout] conv weight (k = (dy+1)*3 + (dx+1)).
_OFFSETS = tuple((dy, dx) for dy in (-1, 0, 1) for dx in (-1, 0, 1))


def make_tap_boundary_mask(F, T):
    """[9, F*T] f32: 1 where tap (dy,dx) reads in-bounds, 0 where zero padding."""
    n = jnp.arange(F * T, dtype=jnp.int32)
    f, t = n // T, n % T
    rows = [((f + dy >= 0) & (f + dy < F) & (t + dx >= 0) & (t + dx < T))
            for dy, dx in _OFFSETS]
    return jnp.stack(rows, axis=0).astype(jnp.float32)


# ----------------------------------------------------------------------------
# Fused NPPC forward kernel (one grid step = one batch element)
# ----------------------------------------------------------------------------
def _fused_nppc_kernel(
        masked_ref, mask_ref, tapmask_ref,
        rw1, rb1, rw2, rb2, rw3, rb3,
        pw1, pb1, pw2, pb2, pw3, pb3,
        o_ref, *, T, n_dirs):
    N = masked_ref.shape[-1]                        # F*T (static)
    tapmask = tapmask_ref[...]                      # [9, N] boundary masks (f32)
    masked = masked_ref[0]                          # [1, N] lane-dense
    mask = mask_ref[0]                              # [1, N]

    def im2col(x):
        """x: [Cin, N] f32 -> cols [9*Cin, N] bf16 via lane rolls + masks."""
        taps = []
        for k, (dy, dx) in enumerate(_OFFSETS):
            if dy == 0 and dx == 0:
                taps.append(x.astype(jnp.bfloat16))
                continue
            # out[n] = x[n + dy*T + dx]; roll(x, s)[n] = x[(n - s) mod N]
            shift = (-(dy * T + dx)) % N
            xt = pltpu.roll(x, shift, 1)
            # Zero padding via boundary mask (exact zeros), cast per-tap to
            # bf16 to keep vreg pressure low before the MXU GEMM.
            taps.append((xt * tapmask[k:k + 1, :]).astype(jnp.bfloat16))
        return jnp.concatenate(taps, axis=0)        # [9*Cin, N] bf16

    def conv3x3(x, w_ref, b_ref, relu):
        """One lane-dense GEMM: w [Cout, 9Cin] @ cols [9Cin, N] -> [Cout, N]."""
        acc = jnp.dot(w_ref[...], im2col(x), preferred_element_type=jnp.float32)
        acc = acc + b_ref[...]                      # bias column [Cout,1], lane bcast
        return jnp.maximum(acc, 0.0) if relu else acc

    # ---- pretrained restoration surrogate + RestorationWrapper mask blend ---
    x0 = jnp.concatenate([masked, mask], axis=0)    # [2, N]
    h = conv3x3(x0, rw1, rb1, True)
    h = conv3x3(h, rw2, rb2, True)
    r = conv3x3(h, rw3, rb3, False)                 # [1, N]
    pred = masked * mask + r * (1.0 - mask)         # keep observed bins (f32)

    # ---- AudioInpaintingPCWrapper surrogate ---------------------------------
    x1 = jnp.concatenate([masked, pred, mask], axis=0)   # [3, N]
    h = conv3x3(x1, pw1, pb1, True)
    h = conv3x3(h, pw2, pb2, True)
    w_dn = conv3x3(h, pw3, pb3, False)              # [n_dirs, N], lane-dense

    # ---- modified Gram-Schmidt over n_dirs directions -----------------------
    # NPPC contract: the UN-normalized residuals are the returned w_mat; the
    # normalized copies are only used to project out later directions.
    qs = []
    for i in range(n_dirs):
        wi = w_dn[i:i + 1, :]                       # [1, N]
        for q in qs:
            wi = wi - q * jnp.sum(wi * q, axis=-1, keepdims=True)
        o_ref[0, i:i + 1, :] = wi                   # residual row -> lane-dense store
        qs.append(wi * jax.lax.rsqrt(
            jnp.sum(wi * wi, axis=-1, keepdims=True) + 1e-12))


def _full_spec(arr):
    zeros = (0,) * arr.ndim
    return pl.BlockSpec(arr.shape, lambda b: zeros)


def nppc_forward_fused(masked, mask, tapmask, weights, *, n_dirs, T):
    """masked, mask: [B, 1, N] f32 -> [B, n_dirs, N] f32 (single pallas_call)."""
    B, _, N = masked.shape
    kern = functools.partial(_fused_nppc_kernel, T=T, n_dirs=n_dirs)
    io_spec = pl.BlockSpec((1, 1, N), lambda b: (b, 0, 0))
    # TODO(synk): for production-size spectrograms add a T-tile grid axis with
    # a 1-column halo (marked "arbitrary") so the per-step working set fits
    # v7x's 64 MiB VMEM; at these shapes the whole frame fits trivially.
    # (Batching G>1 elements per step would further amortize per-step overhead
    # but requires per-segment Gram-Schmidt; B is tiny here.)
    return pl.pallas_call(
        kern,
        out_shape=jax.ShapeDtypeStruct((B, n_dirs, N), jnp.float32),
        grid=(B,),
        in_specs=[io_spec, io_spec, _full_spec(tapmask)]
                 + [_full_spec(w) for w in weights],
        out_specs=pl.BlockSpec((1, n_dirs, N), lambda b: (b, 0, 0)),
        compiler_params=pltpu.CompilerParams(
            dimension_semantics=("parallel",),      # shard batch across TCs
            vmem_limit_bytes=32 * 1024 * 1024),
    )(masked, mask, tapmask, *weights)


# ----------------------------------------------------------------------------
# NPPC model (synthetic parameters, fully-fused Pallas compute)
# ----------------------------------------------------------------------------
class NPPCModelPallas:
    # TODO(synk): the real pretrained UNet / RestorationWrapper and the
    # AudioInpaintingPCWrapper are external checkpoints (wandb / .pt) not
    # available here; small 3-layer 3x3-conv surrogates with identical I/O
    # contracts are used instead (no checkpoint loading).

    def __init__(self, key, hidden=16, n_dirs=4):
        self.n_dirs = n_dirs
        self.hidden = hidden
        keys = jax.random.split(key, 12)

        def w_init(k, shape):
            return 0.1 * jax.random.normal(k, shape, jnp.float32)

        # Raw f32 weights (also used by the pure-JAX reference check).
        self.raw = {
            'r_w1': w_init(keys[0], (3, 3, 2, hidden)),      'r_b1': w_init(keys[1], (hidden,)),
            'r_w2': w_init(keys[2], (3, 3, hidden, hidden)), 'r_b2': w_init(keys[3], (hidden,)),
            'r_w3': w_init(keys[4], (3, 3, hidden, 1)),      'r_b3': w_init(keys[5], (1,)),
            'p_w1': w_init(keys[6], (3, 3, 3, hidden)),      'p_b1': w_init(keys[7], (hidden,)),
            'p_w2': w_init(keys[8], (3, 3, hidden, hidden)), 'p_b2': w_init(keys[9], (hidden,)),
            'p_w3': w_init(keys[10], (3, 3, hidden, n_dirs)), 'p_b3': w_init(keys[11], (n_dirs,)),
        }

        def pack_w(w):   # [3,3,Cin,Cout] -> [Cout, 9*Cin] bf16 (MXU lhs)
            return jnp.transpose(w.reshape(-1, w.shape[-1])).astype(jnp.bfloat16)

        def pack_b(b):   # [Cout] -> [Cout, 1] f32 column (lane-broadcast bias)
            return b.reshape(-1, 1).astype(jnp.float32)

        r = self.raw
        self.weights = (
            pack_w(r['r_w1']), pack_b(r['r_b1']), pack_w(r['r_w2']), pack_b(r['r_b2']),
            pack_w(r['r_w3']), pack_b(r['r_b3']),
            pack_w(r['p_w1']), pack_b(r['p_b1']), pack_w(r['p_w2']), pack_b(r['p_b2']),
            pack_w(r['p_w3']), pack_b(r['p_b3']),
        )

    # --- NPPCModel.forward ---------------------------------------------------
    def forward(self, masked_spec_mag_norm, mask):
        """masked_spec_mag_norm, mask: [B,1,F,T] (NCHW) -> w_mat [B,n_dirs,F,T]."""
        B, _, F, T = masked_spec_mag_norm.shape
        N = F * T
        tapmask = make_tap_boundary_mask(F, T)
        w = nppc_forward_fused(
            masked_spec_mag_norm.reshape(B, 1, N), mask.reshape(B, 1, N),
            tapmask, self.weights, n_dirs=self.n_dirs, T=T)
        return w.reshape(B, self.n_dirs, F, T)


# ----------------------------------------------------------------------------
# Pure-JAX reference (mirrors the kernel's bf16-operand / f32-accum GEMMs)
# ----------------------------------------------------------------------------
def _ref_conv(x, w, b, relu):
    B, F, T, Cin = x.shape
    xp = jnp.pad(x, ((0, 0), (1, 1), (1, 1), (0, 0)))
    cols = jnp.concatenate(
        [xp[:, dy:dy + F, dx:dx + T, :] for dy in range(3) for dx in range(3)],
        axis=-1).reshape(B, F * T, 9 * Cin).astype(jnp.bfloat16)
    w2 = w.reshape(9 * Cin, -1).astype(jnp.bfloat16)
    out = jnp.dot(cols, w2, preferred_element_type=jnp.float32) + b
    out = out.reshape(B, F, T, -1)
    return jnp.maximum(out, 0.0) if relu else out


def nppc_forward_reference(masked, mask, raw, *, n_dirs):
    B, F, T = masked.shape
    x0 = jnp.stack([masked, mask], axis=-1)
    h = _ref_conv(x0, raw['r_w1'], raw['r_b1'], True)
    h = _ref_conv(h, raw['r_w2'], raw['r_b2'], True)
    r = _ref_conv(h, raw['r_w3'], raw['r_b3'], False)[..., 0]
    pred = masked * mask + r * (1.0 - mask)
    x1 = jnp.stack([masked, pred, mask], axis=-1)
    h = _ref_conv(x1, raw['p_w1'], raw['p_b1'], True)
    h = _ref_conv(h, raw['p_w2'], raw['p_b2'], True)
    w = _ref_conv(h, raw['p_w3'], raw['p_b3'], False)            # [B,F,T,n_dirs]
    wf = w.reshape(B, F * T, n_dirs).transpose(0, 2, 1)          # [B,n_dirs,N]
    qs, res = [], []
    for i in range(n_dirs):
        wi = wf[:, i, :]
        for q in qs:
            wi = wi - q * jnp.sum(wi * q, axis=-1, keepdims=True)
        res.append(wi)
        qs.append(wi * jax.lax.rsqrt(jnp.sum(wi * wi, axis=-1, keepdims=True) + 1e-12))
    return jnp.stack(res, axis=1).reshape(B, n_dirs, F, T)


if __name__ == "__main__":
    B, F, T = 2, 16, 16
    n_dirs, hidden = 4, 16

    key = jax.random.PRNGKey(0)
    k_model, k_spec = jax.random.split(key)

    model = NPPCModelPallas(k_model, hidden=hidden, n_dirs=n_dirs)

    spec = jax.random.normal(k_spec, (B, 1, F, T), jnp.float32)
    # binary mask: 1 = observed, 0 = region to inpaint (a block of columns)
    mask = jnp.ones((B, 1, F, T), jnp.float32)
    mask = mask.at[:, :, :, 6:10].set(0.0)
    masked_spec = spec * mask

    w_mat = jax.jit(model.forward)(masked_spec, mask)
    w_mat = jax.block_until_ready(w_mat)

    assert w_mat.shape == (B, n_dirs, F, T), w_mat.shape
    assert w_mat.dtype == jnp.float32
    assert bool(jnp.all(jnp.isfinite(w_mat)))

    # correctness vs pure-JAX reference (same bf16-operand GEMM rounding)
    w_ref = jax.jit(functools.partial(nppc_forward_reference, n_dirs=n_dirs))(
        masked_spec[:, 0], mask[:, 0], model.raw)
    w_ref = jax.block_until_ready(w_ref)
    scale = float(jnp.max(jnp.abs(w_ref))) + 1e-6
    err = float(jnp.max(jnp.abs(w_mat - w_ref)))
    assert err <= 3e-2 * scale + 1e-3, (err, scale)

    # sanity: directions are mutually orthogonal per batch element (Gram-Schmidt)
    wf = w_mat.reshape(B, n_dirs, F * T)
    gram = jnp.einsum("bdn,ben->bde", wf, wf)
    diag = jnp.einsum("bdn,bdn->bd", wf, wf)
    off = gram - jnp.eye(n_dirs)[None] * diag[:, :, None]
    assert float(jnp.max(jnp.abs(off))) < 1e-3 * (float(jnp.max(diag)) + 1e-6)

    print("KERNEL_OK")
</pallas_src>

<mosaic_0001>
module attributes {stable_mosaic.version = 11 : i64} {
  func.func @_fused_nppc_kernel(%arg0: i32, %arg1: memref<1x1x256xf32, #tpu.memory_space<vmem>>, %arg2: memref<1x1x256xf32, #tpu.memory_space<vmem>>, %arg3: memref<9x256xf32, #tpu.memory_space<vmem>>, %arg4: memref<16x18xbf16, #tpu.memory_space<vmem>>, %arg5: memref<16x1xf32, #tpu.memory_space<vmem>>, %arg6: memref<16x144xbf16, #tpu.memory_space<vmem>>, %arg7: memref<16x1xf32, #tpu.memory_space<vmem>>, %arg8: memref<1x144xbf16, #tpu.memory_space<vmem>>, %arg9: memref<1x1xf32, #tpu.memory_space<vmem>>, %arg10: memref<16x27xbf16, #tpu.memory_space<vmem>>, %arg11: memref<16x1xf32, #tpu.memory_space<vmem>>, %arg12: memref<16x144xbf16, #tpu.memory_space<vmem>>, %arg13: memref<16x1xf32, #tpu.memory_space<vmem>>, %arg14: memref<4x144xbf16, #tpu.memory_space<vmem>>, %arg15: memref<4x1xf32, #tpu.memory_space<vmem>>, %arg16: memref<1x4x256xf32, #tpu.memory_space<vmem>>) attributes {dimension_semantics = [#tpu.dimension_semantics<parallel>], iteration_bounds = array<i64: 2>, scalar_prefetch = 0 : i64, scratch_operands = 0 : i64, tpu.core_type = #tpu.core_type<tc>, window_params = [{transform_indices = @transform_0, window_bounds = array<i64: 1, 1, 256>}, {transform_indices = @transform_1, window_bounds = array<i64: 1, 1, 256>}, {pipeline_mode = #tpu.pipeline_mode<synchronous>, transform_indices = @transform_2, window_bounds = array<i64: 9, 256>}, {pipeline_mode = #tpu.pipeline_mode<synchronous>, transform_indices = @transform_3, window_bounds = array<i64: 16, 18>}, {pipeline_mode = #tpu.pipeline_mode<synchronous>, transform_indices = @transform_4, window_bounds = array<i64: 16, 1>}, {pipeline_mode = #tpu.pipeline_mode<synchronous>, transform_indices = @transform_5, window_bounds = array<i64: 16, 144>}, {pipeline_mode = #tpu.pipeline_mode<synchronous>, transform_indices = @transform_6, window_bounds = array<i64: 16, 1>}, {pipeline_mode = #tpu.pipeline_mode<synchronous>, transform_indices = @transform_7, window_bounds = array<i64: 1, 144>}, {pipeline_mode = #tpu.pipeline_mode<synchronous>, transform_indices = @transform_8, window_bounds = array<i64: 1, 1>}, {pipeline_mode = #tpu.pipeline_mode<synchronous>, transform_indices = @transform_9, window_bounds = array<i64: 16, 27>}, {pipeline_mode = #tpu.pipeline_mode<synchronous>, transform_indices = @transform_10, window_bounds = array<i64: 16, 1>}, {pipeline_mode = #tpu.pipeline_mode<synchronous>, transform_indices = @transform_11, window_bounds = array<i64: 16, 144>}, {pipeline_mode = #tpu.pipeline_mode<synchronous>, transform_indices = @transform_12, window_bounds = array<i64: 16, 1>}, {pipeline_mode = #tpu.pipeline_mode<synchronous>, transform_indices = @transform_13, window_bounds = array<i64: 4, 144>}, {pipeline_mode = #tpu.pipeline_mode<synchronous>, transform_indices = @transform_14, window_bounds = array<i64: 4, 1>}, {transform_indices = @transform_15, window_bounds = array<i64: 1, 4, 256>}]} {
    %c0 = arith.constant 0 : index
    %c0_0 = arith.constant 0 : index
    %0 = vector.load %arg3[%c0, %c0_0] : memref<9x256xf32, #tpu.memory_space<vmem>>, vector<9x256xf32>
    %c0_1 = arith.constant 0 : index
    %c0_2 = arith.constant 0 : index
    %c0_3 = arith.constant 0 : index
    %1 = vector.load %arg1[%c0_1, %c0_2, %c0_3] : memref<1x1x256xf32, #tpu.memory_space<vmem>>, vector<1x1x256xf32>
    %2 = vector.shape_cast %1 : vector<1x1x256xf32> to vector<1x256xf32>
    %c0_4 = arith.constant 0 : index
    %c0_5 = arith.constant 0 : index
    %c0_6 = arith.constant 0 : index
    %3 = vector.load %arg2[%c0_4, %c0_5, %c0_6] : memref<1x1x256xf32, #tpu.memory_space<vmem>>, vector<1x1x256xf32>
    %4 = vector.shape_cast %3 : vector<1x1x256xf32> to vector<1x256xf32>
    %5 = tpu.concatenate %2, %4 in 0 : vector<1x256xf32>, vector<1x256xf32> -> vector<2x256xf32>
    %c0_7 = arith.constant 0 : index
    %c0_8 = arith.constant 0 : index
    %6 = vector.load %arg4[%c0_7, %c0_8] : memref<16x18xbf16, #tpu.memory_space<vmem>>, vector<16x18xbf16>
    %c17_i32 = arith.constant 17 : i32
    %7 = tpu.dynamic_rotate %5 by %c17_i32 dim 1 : vector<2x256xf32>, i32 -> vector<2x256xf32>
    %8 = vector.extract_strided_slice %0 {offsets = [0, 0], sizes = [1, 256], strides = [1, 1]} : vector<9x256xf32> to vector<1x256xf32>
    %9 = vector.broadcast %8 : vector<1x256xf32> to vector<2x256xf32>
    %10 = arith.mulf %7, %9 : vector<2x256xf32>
    %11 = arith.truncf %10 : vector<2x256xf32> to vector<2x256xbf16>
    %c16_i32 = arith.constant 16 : i32
    %12 = tpu.dynamic_rotate %5 by %c16_i32 dim 1 : vector<2x256xf32>, i32 -> vector<2x256xf32>
    %13 = vector.extract_strided_slice %0 {offsets = [1, 0], sizes = [1, 256], strides = [1, 1]} : vector<9x256xf32> to vector<1x256xf32>
    %14 = vector.broadcast %13 : vector<1x256xf32> to vector<2x256xf32>
    %15 = arith.mulf %12, %14 : vector<2x256xf32>
    %16 = arith.truncf %15 : vector<2x256xf32> to vector<2x256xbf16>
    %c15_i32 = arith.constant 15 : i32
    %17 = tpu.dynamic_rotate %5 by %c15_i32 dim 1 : vector<2x256xf32>, i32 -> vector<2x256xf32>
    %18 = vector.extract_strided_slice %0 {offsets = [2, 0], sizes = [1, 256], strides = [1, 1]} : vector<9x256xf32> to vector<1x256xf32>
    %19 = vector.broadcast %18 : vector<1x256xf32> to vector<2x256xf32>
    %20 = arith.mulf %17, %19 : vector<2x256xf32>
    %21 = arith.truncf %20 : vector<2x256xf32> to vector<2x256xbf16>
    %c1_i32 = arith.constant 1 : i32
    %22 = tpu.dynamic_rotate %5 by %c1_i32 dim 1 : vector<2x256xf32>, i32 -> vector<2x256xf32>
    %23 = vector.extract_strided_slice %0 {offsets = [3, 0], sizes = [1, 256], strides = [1, 1]} : vector<9x256xf32> to vector<1x256xf32>
    %24 = vector.broadcast %23 : vector<1x256xf32> to vector<2x256xf32>
    %25 = arith.mulf %22, %24 : vector<2x256xf32>
    %26 = arith.truncf %25 : vector<2x256xf32> to vector<2x256xbf16>
    %27 = arith.truncf %5 : vector<2x256xf32> to vector<2x256xbf16>
    %c255_i32 = arith.constant 255 : i32
    %28 = tpu.dynamic_rotate %5 by %c255_i32 dim 1 : vector<2x256xf32>, i32 -> vector<2x256xf32>
    %29 = vector.extract_strided_slice %0 {offsets = [5, 0], sizes = [1, 256], strides = [1, 1]} : vector<9x256xf32> to vector<1x256xf32>
    %30 = vector.broadcast %29 : vector<1x256xf32> to vector<2x256xf32>
    %31 = arith.mulf %28, %30 : vector<2x256xf32>
    %32 = arith.truncf %31 : vector<2x256xf32> to vector<2x256xbf16>
    %c241_i32 = arith.constant 241 : i32
    %33 = tpu.dynamic_rotate %5 by %c241_i32 dim 1 : vector<2x256xf32>, i32 -> vector<2x256xf32>
    %34 = vector.extract_strided_slice %0 {offsets = [6, 0], sizes = [1, 256], strides = [1, 1]} : vector<9x256xf32> to vector<1x256xf32>
    %35 = vector.broadcast %34 : vector<1x256xf32> to vector<2x256xf32>
    %36 = arith.mulf %33, %35 : vector<2x256xf32>
    %37 = arith.truncf %36 : vector<2x256xf32> to vector<2x256xbf16>
    %c240_i32 = arith.constant 240 : i32
    %38 = tpu.dynamic_rotate %5 by %c240_i32 dim 1 : vector<2x256xf32>, i32 -> vector<2x256xf32>
    %39 = vector.extract_strided_slice %0 {offsets = [7, 0], sizes = [1, 256], strides = [1, 1]} : vector<9x256xf32> to vector<1x256xf32>
    %40 = vector.broadcast %39 : vector<1x256xf32> to vector<2x256xf32>
    %41 = arith.mulf %38, %40 : vector<2x256xf32>
    %42 = arith.truncf %41 : vector<2x256xf32> to vector<2x256xbf16>
    %c239_i32 = arith.constant 239 : i32
    %43 = tpu.dynamic_rotate %5 by %c239_i32 dim 1 : vector<2x256xf32>, i32 -> vector<2x256xf32>
    %44 = vector.extract_strided_slice %0 {offsets = [8, 0], sizes = [1, 256], strides = [1, 1]} : vector<9x256xf32> to vector<1x256xf32>
    %45 = vector.broadcast %44 : vector<1x256xf32> to vector<2x256xf32>
    %46 = arith.mulf %43, %45 : vector<2x256xf32>
    %47 = arith.truncf %46 : vector<2x256xf32> to vector<2x256xbf16>
    %48 = tpu.concatenate %11, %16, %21, %26, %27, %32, %37, %42, %47 in 0 : vector<2x256xbf16>, vector<2x256xbf16>, vector<2x256xbf16>, vector<2x256xbf16>, vector<2x256xbf16>, vector<2x256xbf16>, vector<2x256xbf16>, vector<2x256xbf16>, vector<2x256xbf16> -> vector<18x256xbf16>
    %cst = arith.constant dense<0.000000e+00> : vector<16x256xf32>
    %49 = tpu.matmul %6, %48, %cst {dimension_numbers = #tpu.dot_dimension_numbers<[1], [0], [0], [1], [0, 0, 1, 1], [], []>} : vector<16x18xbf16>, vector<18x256xbf16>, vector<16x256xf32> -> vector<16x256xf32>
    %c0_9 = arith.constant 0 : index
    %c0_10 = arith.constant 0 : index
    %50 = vector.load %arg5[%c0_9, %c0_10] : memref<16x1xf32, #tpu.memory_space<vmem>>, vector<16x1xf32>
    %51 = vector.broadcast %50 : vector<16x1xf32> to vector<16x256xf32>
    %52 = arith.addf %49, %51 : vector<16x256xf32>
    %cst_11 = arith.constant 0.000000e+00 : f32
    %53 = vector.broadcast %cst_11 : f32 to vector<16x256xf32>
    %54 = arith.maximumf %52, %53 : vector<16x256xf32>
    %c0_12 = arith.constant 0 : index
    %c0_13 = arith.constant 0 : index
    %55 = vector.load %arg6[%c0_12, %c0_13] : memref<16x144xbf16, #tpu.memory_space<vmem>>, vector<16x144xbf16>
    %c17_i32_14 = arith.constant 17 : i32
    %56 = tpu.dynamic_rotate %54 by %c17_i32_14 dim 1 : vector<16x256xf32>, i32 -> vector<16x256xf32>
    %57 = vector.extract_strided_slice %0 {offsets = [0, 0], sizes = [1, 256], strides = [1, 1]} : vector<9x256xf32> to vector<1x256xf32>
    %58 = vector.broadcast %57 : vector<1x256xf32> to vector<16x256xf32>
    %59 = arith.mulf %56, %58 : vector<16x256xf32>
    %60 = arith.truncf %59 : vector<16x256xf32> to vector<16x256xbf16>
    %c16_i32_15 = arith.constant 16 : i32
    %61 = tpu.dynamic_rotate %54 by %c16_i32_15 dim 1 : vector<16x256xf32>, i32 -> vector<16x256xf32>
    %62 = vector.extract_strided_slice %0 {offsets = [1, 0], sizes = [1, 256], strides = [1, 1]} : vector<9x256xf32> to vector<1x256xf32>
    %63 = vector.broadcast %62 : vector<1x256xf32> to vector<16x256xf32>
    %64 = arith.mulf %61, %63 : vector<16x256xf32>
    %65 = arith.truncf %64 : vector<16x256xf32> to vector<16x256xbf16>
    %c15_i32_16 = arith.constant 15 : i32
    %66 = tpu.dynamic_rotate %54 by %c15_i32_16 dim 1 : vector<16x256xf32>, i32 -> vector<16x256xf32>
    %67 = vector.extract_strided_slice %0 {offsets = [2, 0], sizes = [1, 256], strides = [1, 1]} : vector<9x256xf32> to vector<1x256xf32>
    %68 = vector.broadcast %67 : vector<1x256xf32> to vector<16x256xf32>
    %69 = arith.mulf %66, %68 : vector<16x256xf32>
    %70 = arith.truncf %69 : vector<16x256xf32> to vector<16x256xbf16>
    %c1_i32_17 = arith.constant 1 : i32
    %71 = tpu.dynamic_rotate %54 by %c1_i32_17 dim 1 : vector<16x256xf32>, i32 -> vector<16x256xf32>
    %72 = vector.extract_strided_slice %0 {offsets = [3, 0], sizes = [1, 256], strides = [1, 1]} : vector<9x256xf32> to vector<1x256xf32>
    %73 = vector.broadcast %72 : vector<1x256xf32> to vector<16x256xf32>
    %74 = arith.mulf %71, %73 : vector<16x256xf32>
    %75 = arith.truncf %74 : vector<16x256xf32> to vector<16x256xbf16>
    %76 = arith.truncf %54 : vector<16x256xf32> to vector<16x256xbf16>
    %c255_i32_18 = arith.constant 255 : i32
    %77 = tpu.dynamic_rotate %54 by %c255_i32_18 dim 1 : vector<16x256xf32>, i32 -> vector<16x256xf32>
    %78 = vector.extract_strided_slice %0 {offsets = [5, 0], sizes = [1, 256], strides = [1, 1]} : vector<9x256xf32> to vector<1x256xf32>
    %79 = vector.broadcast %78 : vector<1x256xf32> to vector<16x256xf32>
    %80 = arith.mulf %77, %79 : vector<16x256xf32>
    %81 = arith.truncf %80 : vector<16x256xf32> to vector<16x256xbf16>
    %c241_i32_19 = arith.constant 241 : i32
    %82 = tpu.dynamic_rotate %54 by %c241_i32_19 dim 1 : vector<16x256xf32>, i32 -> vector<16x256xf32>
    %83 = vector.extract_strided_slice %0 {offsets = [6, 0], sizes = [1, 256], strides = [1, 1]} : vector<9x256xf32> to vector<1x256xf32>
    %84 = vector.broadcast %83 : vector<1x256xf32> to vector<16x256xf32>
    %85 = arith.mulf %82, %84 : vector<16x256xf32>
    %86 = arith.truncf %85 : vector<16x256xf32> to vector<16x256xbf16>
    %c240_i32_20 = arith.constant 240 : i32
    %87 = tpu.dynamic_rotate %54 by %c240_i32_20 dim 1 : vector<16x256xf32>, i32 -> vector<16x256xf32>
    %88 = vector.extract_strided_slice %0 {offsets = [7, 0], sizes = [1, 256], strides = [1, 1]} : vector<9x256xf32> to vector<1x256xf32>
    %89 = vector.broadcast %88 : vector<1x256xf32> to vector<16x256xf32>
    %90 = arith.mulf %87, %89 : vector<16x256xf32>
    %91 = arith.truncf %90 : vector<16x256xf32> to vector<16x256xbf16>
    %c239_i32_21 = arith.constant 239 : i32
    %92 = tpu.dynamic_rotate %54 by %c239_i32_21 dim 1 : vector<16x256xf32>, i32 -> vector<16x256xf32>
    %93 = vector.extract_strided_slice %0 {offsets = [8, 0], sizes = [1, 256], strides = [1, 1]} : vector<9x256xf32> to vector<1x256xf32>
    %94 = vector.broadcast %93 : vector<1x256xf32> to vector<16x256xf32>
    %95 = arith.mulf %92, %94 : vector<16x256xf32>
    %96 = arith.truncf %95 : vector<16x256xf32> to vector<16x256xbf16>
    %97 = tpu.concatenate %60, %65, %70, %75, %76, %81, %86, %91, %96 in 0 : vector<16x256xbf16>, vector<16x256xbf16>, vector<16x256xbf16>, vector<16x256xbf16>, vector<16x256xbf16>, vector<16x256xbf16>, vector<16x256xbf16>, vector<16x256xbf16>, vector<16x256xbf16> -> vector<144x256xbf16>
    %cst_22 = arith.constant dense<0.000000e+00> : vector<16x256xf32>
    %98 = tpu.matmul %55, %97, %cst_22 {dimension_numbers = #tpu.dot_dimension_numbers<[1], [0], [0], [1], [0, 0, 1, 1], [], []>} : vector<16x144xbf16>, vector<144x256xbf16>, vector<16x256xf32> -> vector<16x256xf32>
    %c0_23 = arith.constant 0 : index
    %c0_24 = arith.constant 0 : index
    %99 = vector.load %arg7[%c0_23, %c0_24] : memref<16x1xf32, #tpu.memory_space<vmem>>, vector<16x1xf32>
    %100 = vector.broadcast %99 : vector<16x1xf32> to vector<16x256xf32>
    %101 = arith.addf %98, %100 : vector<16x256xf32>
    %cst_25 = arith.constant 0.000000e+00 : f32
    %102 = vector.broadcast %cst_25 : f32 to vector<16x256xf32>
    %103 = arith.maximumf %101, %102 : vector<16x256xf32>
    %c0_26 = arith.constant 0 : index
    %c0_27 = arith.constant 0 : index
    %104 = vector.load %arg8[%c0_26, %c0_27] : memref<1x144xbf16, #tpu.memory_space<vmem>>, vector<1x144xbf16>
    %c17_i32_28 = arith.constant 17 : i32
    %105 = tpu.dynamic_rotate %103 by %c17_i32_28 dim 1 : vector<16x256xf32>, i32 -> vector<16x256xf32>
    %106 = vector.extract_strided_slice %0 {offsets = [0, 0], sizes = [1, 256], strides = [1, 1]} : vector<9x256xf32> to vector<1x256xf32>
    %107 = vector.broadcast %106 : vector<1x256xf32> to vector<16x256xf32>
    %108 = arith.mulf %105, %107 : vector<16x256xf32>
    %109 = arith.truncf %108 : vector<16x256xf32> to vector<16x256xbf16>
    %c16_i32_29 = arith.constant 16 : i32
    %110 = tpu.dynamic_rotate %103 by %c16_i32_29 dim 1 : vector<16x256xf32>, i32 -> vector<16x256xf32>
    %111 = vector.extract_strided_slice %0 {offsets = [1, 0], sizes = [1, 256], strides = [1, 1]} : vector<9x256xf32> to vector<1x256xf32>
    %112 = vector.broadcast %111 : vector<1x256xf32> to vector<16x256xf32>
    %113 = arith.mulf %110, %112 : vector<16x256xf32>
    %114 = arith.truncf %113 : vector<16x256xf32> to vector<16x256xbf16>
    %c15_i32_30 = arith.constant 15 : i32
    %115 = tpu.dynamic_rotate %103 by %c15_i32_30 dim 1 : vector<16x256xf32>, i32 -> vector<16x256xf32>
    %116 = vector.extract_strided_slice %0 {offsets = [2, 0], sizes = [1, 256], strides = [1, 1]} : vector<9x256xf32> to vector<1x256xf32>
    %117 = vector.broadcast %116 : vector<1x256xf32> to vector<16x256xf32>
    %118 = arith.mulf %115, %117 : vector<16x256xf32>
    %119 = arith.truncf %118 : vector<16x256xf32> to vector<16x256xbf16>
    %c1_i32_31 = arith.constant 1 : i32
    %120 = tpu.dynamic_rotate %103 by %c1_i32_31 dim 1 : vector<16x256xf32>, i32 -> vector<16x256xf32>
    %121 = vector.extract_strided_slice %0 {offsets = [3, 0], sizes = [1, 256], strides = [1, 1]} : vector<9x256xf32> to vector<1x256xf32>
    %122 = vector.broadcast %121 : vector<1x256xf32> to vector<16x256xf32>
    %123 = arith.mulf %120, %122 : vector<16x256xf32>
    %124 = arith.truncf %123 : vector<16x256xf32> to vector<16x256xbf16>
    %125 = arith.truncf %103 : vector<16x256xf32> to vector<16x256xbf16>
    %c255_i32_32 = arith.constant 255 : i32
    %126 = tpu.dynamic_rotate %103 by %c255_i32_32 dim 1 : vector<16x256xf32>, i32 -> vector<16x256xf32>
    %127 = vector.extract_strided_slice %0 {offsets = [5, 0], sizes = [1, 256], strides = [1, 1]} : vector<9x256xf32> to vector<1x256xf32>
    %128 = vector.broadcast %127 : vector<1x256xf32> to vector<16x256xf32>
    %129 = arith.mulf %126, %128 : vector<16x256xf32>
    %130 = arith.truncf %129 : vector<16x256xf32> to vector<16x256xbf16>
    %c241_i32_33 = arith.constant 241 : i32
    %131 = tpu.dynamic_rotate %103 by %c241_i32_33 dim 1 : vector<16x256xf32>, i32 -> vector<16x256xf32>
    %132 = vector.extract_strided_slice %0 {offsets = [6, 0], sizes = [1, 256], strides = [1, 1]} : vector<9x256xf32> to vector<1x256xf32>
    %133 = vector.broadcast %132 : vector<1x256xf32> to vector<16x256xf32>
    %134 = arith.mulf %131, %133 : vector<16x256xf32>
    %135 = arith.truncf %134 : vector<16x256xf32> to vector<16x256xbf16>
    %c240_i32_34 = arith.constant 240 : i32
    %136 = tpu.dynamic_rotate %103 by %c240_i32_34 dim 1 : vector<16x256xf32>, i32 -> vector<16x256xf32>
    %137 = vector.extract_strided_slice %0 {offsets = [7, 0], sizes = [1, 256], strides = [1, 1]} : vector<9x256xf32> to vector<1x256xf32>
    %138 = vector.broadcast %137 : vector<1x256xf32> to vector<16x256xf32>
    %139 = arith.mulf %136, %138 : vector<16x256xf32>
    %140 = arith.truncf %139 : vector<16x256xf32> to vector<16x256xbf16>
    %c239_i32_35 = arith.constant 239 : i32
    %141 = tpu.dynamic_rotate %103 by %c239_i32_35 dim 1 : vector<16x256xf32>, i32 -> vector<16x256xf32>
    %142 = vector.extract_strided_slice %0 {offsets = [8, 0], sizes = [1, 256], strides = [1, 1]} : vector<9x256xf32> to vector<1x256xf32>
    %143 = vector.broadcast %142 : vector<1x256xf32> to vector<16x256xf32>
    %144 = arith.mulf %141, %143 : vector<16x256xf32>
    %145 = arith.truncf %144 : vector<16x256xf32> to vector<16x256xbf16>
    %146 = tpu.concatenate %109, %114, %119, %124, %125, %130, %135, %140, %145 in 0 : vector<16x256xbf16>, vector<16x256xbf16>, vector<16x256xbf16>, vector<16x256xbf16>, vector<16x256xbf16>, vector<16x256xbf16>, vector<16x256xbf16>, vector<16x256xbf16>, vector<16x256xbf16> -> vector<144x256xbf16>
    %cst_36 = arith.constant dense<0.000000e+00> : vector<1x256xf32>
    %147 = tpu.matmul %104, %146, %cst_36 {dimension_numbers = #tpu.dot_dimension_numbers<[1], [0], [0], [1], [0, 0, 1, 1], [], []>} : vector<1x144xbf16>, vector<144x256xbf16>, vector<1x256xf32> -> vector<1x256xf32>
    %c0_37 = arith.constant 0 : index
    %c0_38 = arith.constant 0 : index
    %148 = vector.load %arg9[%c0_37, %c0_38] : memref<1x1xf32, #tpu.memory_space<vmem>>, vector<1x1xf32>
    %149 = vector.broadcast %148 : vector<1x1xf32> to vector<1x256xf32>
    %150 = arith.addf %147, %149 : vector<1x256xf32>
    %151 = arith.mulf %2, %4 : vector<1x256xf32>
    %cst_39 = arith.constant 1.000000e+00 : f32
    %152 = vector.broadcast %cst_39 : f32 to vector<1x256xf32>
    %153 = arith.subf %152, %4 : vector<1x256xf32>
    %154 = arith.mulf %150, %153 : vector<1x256xf32>
    %155 = arith.addf %151, %154 : vector<1x256xf32>
    %156 = tpu.concatenate %2, %155, %4 in 0 : vector<1x256xf32>, vector<1x256xf32>, vector<1x256xf32> -> vector<3x256xf32>
    %c0_40 = arith.constant 0 : index
    %c0_41 = arith.constant 0 : index
    %157 = vector.load %arg10[%c0_40, %c0_41] : memref<16x27xbf16, #tpu.memory_space<vmem>>, vector<16x27xbf16>
    %c17_i32_42 = arith.constant 17 : i32
    %158 = tpu.dynamic_rotate %156 by %c17_i32_42 dim 1 : vector<3x256xf32>, i32 -> vector<3x256xf32>
    %159 = vector.extract_strided_slice %0 {offsets = [0, 0], sizes = [1, 256], strides = [1, 1]} : vector<9x256xf32> to vector<1x256xf32>
    %160 = vector.broadcast %159 : vector<1x256xf32> to vector<3x256xf32>
    %161 = arith.mulf %158, %160 : vector<3x256xf32>
    %162 = arith.truncf %161 : vector<3x256xf32> to vector<3x256xbf16>
    %c16_i32_43 = arith.constant 16 : i32
    %163 = tpu.dynamic_rotate %156 by %c16_i32_43 dim 1 : vector<3x256xf32>, i32 -> vector<3x256xf32>
    %164 = vector.extract_strided_slice %0 {offsets = [1, 0], sizes = [1, 256], strides = [1, 1]} : vector<9x256xf32> to vector<1x256xf32>
    %165 = vector.broadcast %164 : vector<1x256xf32> to vector<3x256xf32>
    %166 = arith.mulf %163, %165 : vector<3x256xf32>
    %167 = arith.truncf %166 : vector<3x256xf32> to vector<3x256xbf16>
    %c15_i32_44 = arith.constant 15 : i32
    %168 = tpu.dynamic_rotate %156 by %c15_i32_44 dim 1 : vector<3x256xf32>, i32 -> vector<3x256xf32>
    %169 = vector.extract_strided_slice %0 {offsets = [2, 0], sizes = [1, 256], strides = [1, 1]} : vector<9x256xf32> to vector<1x256xf32>
    %170 = vector.broadcast %169 : vector<1x256xf32> to vector<3x256xf32>
    %171 = arith.mulf %168, %170 : vector<3x256xf32>
    %172 = arith.truncf %171 : vector<3x256xf32> to vector<3x256xbf16>
    %c1_i32_45 = arith.constant 1 : i32
    %173 = tpu.dynamic_rotate %156 by %c1_i32_45 dim 1 : vector<3x256xf32>, i32 -> vector<3x256xf32>
    %174 = vector.extract_strided_slice %0 {offsets = [3, 0], sizes = [1, 256], strides = [1, 1]} : vector<9x256xf32> to vector<1x256xf32>
    %175 = vector.broadcast %174 : vector<1x256xf32> to vector<3x256xf32>
    %176 = arith.mulf %173, %175 : vector<3x256xf32>
    %177 = arith.truncf %176 : vector<3x256xf32> to vector<3x256xbf16>
    %178 = arith.truncf %156 : vector<3x256xf32> to vector<3x256xbf16>
    %c255_i32_46 = arith.constant 255 : i32
    %179 = tpu.dynamic_rotate %156 by %c255_i32_46 dim 1 : vector<3x256xf32>, i32 -> vector<3x256xf32>
    %180 = vector.extract_strided_slice %0 {offsets = [5, 0], sizes = [1, 256], strides = [1, 1]} : vector<9x256xf32> to vector<1x256xf32>
    %181 = vector.broadcast %180 : vector<1x256xf32> to vector<3x256xf32>
    %182 = arith.mulf %179, %181 : vector<3x256xf32>
    %183 = arith.truncf %182 : vector<3x256xf32> to vector<3x256xbf16>
    %c241_i32_47 = arith.constant 241 : i32
    %184 = tpu.dynamic_rotate %156 by %c241_i32_47 dim 1 : vector<3x256xf32>, i32 -> vector<3x256xf32>
    %185 = vector.extract_strided_slice %0 {offsets = [6, 0], sizes = [1, 256], strides = [1, 1]} : vector<9x256xf32> to vector<1x256xf32>
    %186 = vector.broadcast %185 : vector<1x256xf32> to vector<3x256xf32>
    %187 = arith.mulf %184, %186 : vector<3x256xf32>
    %188 = arith.truncf %187 : vector<3x256xf32> to vector<3x256xbf16>
    %c240_i32_48 = arith.constant 240 : i32
    %189 = tpu.dynamic_rotate %156 by %c240_i32_48 dim 1 : vector<3x256xf32>, i32 -> vector<3x256xf32>
    %190 = vector.extract_strided_slice %0 {offsets = [7, 0], sizes = [1, 256], strides = [1, 1]} : vector<9x256xf32> to vector<1x256xf32>
    %191 = vector.broadcast %190 : vector<1x256xf32> to vector<3x256xf32>
    %192 = arith.mulf %189, %191 : vector<3x256xf32>
    %193 = arith.truncf %192 : vector<3x256xf32> to vector<3x256xbf16>
    %c239_i32_49 = arith.constant 239 : i32
    %194 = tpu.dynamic_rotate %156 by %c239_i32_49 dim 1 : vector<3x256xf32>, i32 -> vector<3x256xf32>
    %195 = vector.extract_strided_slice %0 {offsets = [8, 0], sizes = [1, 256], strides = [1, 1]} : vector<9x256xf32> to vector<1x256xf32>
    %196 = vector.broadcast %195 : vector<1x256xf32> to vector<3x256xf32>
    %197 = arith.mulf %194, %196 : vector<3x256xf32>
    %198 = arith.truncf %197 : vector<3x256xf32> to vector<3x256xbf16>
    %199 = tpu.concatenate %162, %167, %172, %177, %178, %183, %188, %193, %198 in 0 : vector<3x256xbf16>, vector<3x256xbf16>, vector<3x256xbf16>, vector<3x256xbf16>, vector<3x256xbf16>, vector<3x256xbf16>, vector<3x256xbf16>, vector<3x256xbf16>, vector<3x256xbf16> -> vector<27x256xbf16>
    %cst_50 = arith.constant dense<0.000000e+00> : vector<16x256xf32>
    %200 = tpu.matmul %157, %199, %cst_50 {dimension_numbers = #tpu.dot_dimension_numbers<[1], [0], [0], [1], [0, 0, 1, 1], [], []>} : vector<16x27xbf16>, vector<27x256xbf16>, vector<16x256xf32> -> vector<16x256xf32>
    %c0_51 = arith.constant 0 : index
    %c0_52 = arith.constant 0 : index
    %201 = vector.load %arg11[%c0_51, %c0_52] : memref<16x1xf32, #tpu.memory_space<vmem>>, vector<16x1xf32>
    %202 = vector.broadcast %201 : vector<16x1xf32> to vector<16x256xf32>
    %203 = arith.addf %200, %202 : vector<16x256xf32>
    %cst_53 = arith.constant 0.000000e+00 : f32
    %204 = vector.broadcast %cst_53 : f32 to vector<16x256xf32>
    %205 = arith.maximumf %203, %204 : vector<16x256xf32>
    %c0_54 = arith.constant 0 : index
    %c0_55 = arith.constant 0 : index
    %206 = vector.load %arg12[%c0_54, %c0_55] : memref<16x144xbf16, #tpu.memory_space<vmem>>, vector<16x144xbf16>
    %c17_i32_56 = arith.constant 17 : i32
    %207 = tpu.dynamic_rotate %205 by %c17_i32_56 dim 1 : vector<16x256xf32>, i32 -> vector<16x256xf32>
    %208 = vector.extract_strided_slice %0 {offsets = [0, 0], sizes = [1, 256], strides = [1, 1]} : vector<9x256xf32> to vector<1x256xf32>
    %209 = vector.broadcast %208 : vector<1x256xf32> to vector<16x256xf32>
    %210 = arith.mulf %207, %209 : vector<16x256xf32>
    %211 = arith.truncf %210 : vector<16x256xf32> to vector<16x256xbf16>
    %c16_i32_57 = arith.constant 16 : i32
    %212 = tpu.dynamic_rotate %205 by %c16_i32_57 dim 1 : vector<16x256xf32>, i32 -> vector<16x256xf32>
    %213 = vector.extract_strided_slice %0 {offsets = [1, 0], sizes = [1, 256], strides = [1, 1]} : vector<9x256xf32> to vector<1x256xf32>
    %214 = vector.broadcast %213 : vector<1x256xf32> to vector<16x256xf32>
    %215 = arith.mulf %212, %214 : vector<16x256xf32>
    %216 = arith.truncf %215 : vector<16x256xf32> to vector<16x256xbf16>
    %c15_i32_58 = arith.constant 15 : i32
    %217 = tpu.dynamic_rotate %205 by %c15_i32_58 dim 1 : vector<16x256xf32>, i32 -> vector<16x256xf32>
    %218 = vector.extract_strided_slice %0 {offsets = [2, 0], sizes = [1, 256], strides = [1, 1]} : vector<9x256xf32> to vector<1x256xf32>
    %219 = vector.broadcast %218 : vector<1x256xf32> to vector<16x256xf32>
    %220 = arith.mulf %217, %219 : vector<16x256xf32>
    %221 = arith.truncf %220 : vector<16x256xf32> to vector<16x256xbf16>
    %c1_i32_59 = arith.constant 1 : i32
    %222 = tpu.dynamic_rotate %205 by %c1_i32_59 dim 1 : vector<16x256xf32>, i32 -> vector<16x256xf32>
    %223 = vector.extract_strided_slice %0 {offsets = [3, 0], sizes = [1, 256], strides = [1, 1]} : vector<9x256xf32> to vector<1x256xf32>
    %224 = vector.broadcast %223 : vector<1x256xf32> to vector<16x256xf32>
    %225 = arith.mulf %222, %224 : vector<16x256xf32>
    %226 = arith.truncf %225 : vector<16x256xf32> to vector<16x256xbf16>
    %227 = arith.truncf %205 : vector<16x256xf32> to vector<16x256xbf16>
    %c255_i32_60 = arith.constant 255 : i32
    %228 = tpu.dynamic_rotate %205 by %c255_i32_60 dim 1 : vector<16x256xf32>, i32 -> vector<16x256xf32>
    %229 = vector.extract_strided_slice %0 {offsets = [5, 0], sizes = [1, 256], strides = [1, 1]} : vector<9x256xf32> to vector<1x256xf32>
    %230 = vector.broadcast %229 : vector<1x256xf32> to vector<16x256xf32>
    %231 = arith.mulf %228, %230 : vector<16x256xf32>
    %232 = arith.truncf %231 : vector<16x256xf32> to vector<16x256xbf16>
    %c241_i32_61 = arith.constant 241 : i32
    %233 = tpu.dynamic_rotate %205 by %c241_i32_61 dim 1 : vector<16x256xf32>, i32 -> vector<16x256xf32>
    %234 = vector.extract_strided_slice %0 {offsets = [6, 0], sizes = [1, 256], strides = [1, 1]} : vector<9x256xf32> to vector<1x256xf32>
    %235 = vector.broadcast %234 : vector<1x256xf32> to vector<16x256xf32>
    %236 = arith.mulf %233, %235 : vector<16x256xf32>
    %237 = arith.truncf %236 : vector<16x256xf32> to vector<16x256xbf16>
    %c240_i32_62 = arith.constant 240 : i32
    %238 = tpu.dynamic_rotate %205 by %c240_i32_62 dim 1 : vector<16x256xf32>, i32 -> vector<16x256xf32>
    %239 = vector.extract_strided_slice %0 {offsets = [7, 0], sizes = [1, 256], strides = [1, 1]} : vector<9x256xf32> to vector<1x256xf32>
    %240 = vector.broadcast %239 : vector<1x256xf32> to vector<16x256xf32>
    %241 = arith.mulf %238, %240 : vector<16x256xf32>
    %242 = arith.truncf %241 : vector<16x256xf32> to vector<16x256xbf16>
    %c239_i32_63 = arith.constant 239 : i32
    %243 = tpu.dynamic_rotate %205 by %c239_i32_63 dim 1 : vector<16x256xf32>, i32 -> vector<16x256xf32>
    %244 = vector.extract_strided_slice %0 {offsets = [8, 0], sizes = [1, 256], strides = [1, 1]} : vector<9x256xf32> to vector<1x256xf32>
    %245 = vector.broadcast %244 : vector<1x256xf32> to vector<16x256xf32>
    %246 = arith.mulf %243, %245 : vector<16x256xf32>
    %247 = arith.truncf %246 : vector<16x256xf32> to vector<16x256xbf16>
    %248 = tpu.concatenate %211, %216, %221, %226, %227, %232, %237, %242, %247 in 0 : vector<16x256xbf16>, vector<16x256xbf16>, vector<16x256xbf16>, vector<16x256xbf16>, vector<16x256xbf16>, vector<16x256xbf16>, vector<16x256xbf16>, vector<16x256xbf16>, vector<16x256xbf16> -> vector<144x256xbf16>
    %cst_64 = arith.constant dense<0.000000e+00> : vector<16x256xf32>
    %249 = tpu.matmul %206, %248, %cst_64 {dimension_numbers = #tpu.dot_dimension_numbers<[1], [0], [0], [1], [0, 0, 1, 1], [], []>} : vector<16x144xbf16>, vector<144x256xbf16>, vector<16x256xf32> -> vector<16x256xf32>
    %c0_65 = arith.constant 0 : index
    %c0_66 = arith.constant 0 : index
    %250 = vector.load %arg13[%c0_65, %c0_66] : memref<16x1xf32, #tpu.memory_space<vmem>>, vector<16x1xf32>
    %251 = vector.broadcast %250 : vector<16x1xf32> to vector<16x256xf32>
    %252 = arith.addf %249, %251 : vector<16x256xf32>
    %cst_67 = arith.constant 0.000000e+00 : f32
    %253 = vector.broadcast %cst_67 : f32 to vector<16x256xf32>
    %254 = arith.maximumf %252, %253 : vector<16x256xf32>
    %c0_68 = arith.constant 0 : index
    %c0_69 = arith.constant 0 : index
    %255 = vector.load %arg14[%c0_68, %c0_69] : memref<4x144xbf16, #tpu.memory_space<vmem>>, vector<4x144xbf16>
    %c17_i32_70 = arith.constant 17 : i32
    %256 = tpu.dynamic_rotate %254 by %c17_i32_70 dim 1 : vector<16x256xf32>, i32 -> vector<16x256xf32>
    %257 = vector.extract_strided_slice %0 {offsets = [0, 0], sizes = [1, 256], strides = [1, 1]} : vector<9x256xf32> to vector<1x256xf32>
    %258 = vector.broadcast %257 : vector<1x256xf32> to vector<16x256xf32>
    %259 = arith.mulf %256, %258 : vector<16x256xf32>
    %260 = arith.truncf %259 : vector<16x256xf32> to vector<16x256xbf16>
    %c16_i32_71 = arith.constant 16 : i32
    %261 = tpu.dynamic_rotate %254 by %c16_i32_71 dim 1 : vector<16x256xf32>, i32 -> vector<16x256xf32>
    %262 = vector.extract_strided_slice %0 {offsets = [1, 0], sizes = [1, 256], strides = [1, 1]} : vector<9x256xf32> to vector<1x256xf32>
    %263 = vector.broadcast %262 : vector<1x256xf32> to vector<16x256xf32>
    %264 = arith.mulf %261, %263 : vector<16x256xf32>
    %265 = arith.truncf %264 : vector<16x256xf32> to vector<16x256xbf16>
    %c15_i32_72 = arith.constant 15 : i32
    %266 = tpu.dynamic_rotate %254 by %c15_i32_72 dim 1 : vector<16x256xf32>, i32 -> vector<16x256xf32>
    %267 = vector.extract_strided_slice %0 {offsets = [2, 0], sizes = [1, 256], strides = [1, 1]} : vector<9x256xf32> to vector<1x256xf32>
    %268 = vector.broadcast %267 : vector<1x256xf32> to vector<16x256xf32>
    %269 = arith.mulf %266, %268 : vector<16x256xf32>
    %270 = arith.truncf %269 : vector<16x256xf32> to vector<16x256xbf16>
    %c1_i32_73 = arith.constant 1 : i32
    %271 = tpu.dynamic_rotate %254 by %c1_i32_73 dim 1 : vector<16x256xf32>, i32 -> vector<16x256xf32>
    %272 = vector.extract_strided_slice %0 {offsets = [3, 0], sizes = [1, 256], strides = [1, 1]} : vector<9x256xf32> to vector<1x256xf32>
    %273 = vector.broadcast %272 : vector<1x256xf32> to vector<16x256xf32>
    %274 = arith.mulf %271, %273 : vector<16x256xf32>
    %275 = arith.truncf %274 : vector<16x256xf32> to vector<16x256xbf16>
    %276 = arith.truncf %254 : vector<16x256xf32> to vector<16x256xbf16>
    %c255_i32_74 = arith.constant 255 : i32
    %277 = tpu.dynamic_rotate %254 by %c255_i32_74 dim 1 : vector<16x256xf32>, i32 -> vector<16x256xf32>
    %278 = vector.extract_strided_slice %0 {offsets = [5, 0], sizes = [1, 256], strides = [1, 1]} : vector<9x256xf32> to vector<1x256xf32>
    %279 = vector.broadcast %278 : vector<1x256xf32> to vector<16x256xf32>
    %280 = arith.mulf %277, %279 : vector<16x256xf32>
    %281 = arith.truncf %280 : vector<16x256xf32> to vector<16x256xbf16>
    %c241_i32_75 = arith.constant 241 : i32
    %282 = tpu.dynamic_rotate %254 by %c241_i32_75 dim 1 : vector<16x256xf32>, i32 -> vector<16x256xf32>
    %283 = vector.extract_strided_slice %0 {offsets = [6, 0], sizes = [1, 256], strides = [1, 1]} : vector<9x256xf32> to vector<1x256xf32>
    %284 = vector.broadcast %283 : vector<1x256xf32> to vector<16x256xf32>
    %285 = arith.mulf %282, %284 : vector<16x256xf32>
    %286 = arith.truncf %285 : vector<16x256xf32> to vector<16x256xbf16>
    %c240_i32_76 = arith.constant 240 : i32
    %287 = tpu.dynamic_rotate %254 by %c240_i32_76 dim 1 : vector<16x256xf32>, i32 -> vector<16x256xf32>
    %288 = vector.extract_strided_slice %0 {offsets = [7, 0], sizes = [1, 256], strides = [1, 1]} : vector<9x256xf32> to vector<1x256xf32>
    %289 = vector.broadcast %288 : vector<1x256xf32> to vector<16x256xf32>
    %290 = arith.mulf %287, %289 : vector<16x256xf32>
    %291 = arith.truncf %290 : vector<16x256xf32> to vector<16x256xbf16>
    %c239_i32_77 = arith.constant 239 : i32
    %292 = tpu.dynamic_rotate %254 by %c239_i32_77 dim 1 : vector<16x256xf32>, i32 -> vector<16x256xf32>
    %293 = vector.extract_strided_slice %0 {offsets = [8, 0], sizes = [1, 256], strides = [1, 1]} : vector<9x256xf32> to vector<1x256xf32>
    %294 = vector.broadcast %293 : vector<1x256xf32> to vector<16x256xf32>
    %295 = arith.mulf %292, %294 : vector<16x256xf32>
    %296 = arith.truncf %295 : vector<16x256xf32> to vector<16x256xbf16>
    %297 = tpu.concatenate %260, %265, %270, %275, %276, %281, %286, %291, %296 in 0 : vector<16x256xbf16>, vector<16x256xbf16>, vector<16x256xbf16>, vector<16x256xbf16>, vector<16x256xbf16>, vector<16x256xbf16>, vector<16x256xbf16>, vector<16x256xbf16>, vector<16x256xbf16> -> vector<144x256xbf16>
    %cst_78 = arith.constant dense<0.000000e+00> : vector<4x256xf32>
    %298 = tpu.matmul %255, %297, %cst_78 {dimension_numbers = #tpu.dot_dimension_numbers<[1], [0], [0], [1], [0, 0, 1, 1], [], []>} : vector<4x144xbf16>, vector<144x256xbf16>, vector<4x256xf32> -> vector<4x256xf32>
    %c0_79 = arith.constant 0 : index
    %c0_80 = arith.constant 0 : index
    %299 = vector.load %arg15[%c0_79, %c0_80] : memref<4x1xf32, #tpu.memory_space<vmem>>, vector<4x1xf32>
    %300 = vector.broadcast %299 : vector<4x1xf32> to vector<4x256xf32>
    %301 = arith.addf %298, %300 : vector<4x256xf32>
    %302 = vector.extract_strided_slice %301 {offsets = [0, 0], sizes = [1, 256], strides = [1, 1]} : vector<4x256xf32> to vector<1x256xf32>
    %c0_81 = arith.constant 0 : index
    %c0_82 = arith.constant 0 : index
    %c0_83 = arith.constant 0 : index
    %303 = vector.load %arg16[%c0_81, %c0_82, %c0_83] : memref<1x4x256xf32, #tpu.memory_space<vmem>>, vector<1x1x256xf32>
    %304 = vector.shape_cast %303 : vector<1x1x256xf32> to vector<1x256xf32>
    %305 = vector.shape_cast %302 : vector<1x256xf32> to vector<1x1x256xf32>
    tpu.vector_store %arg16[%c0_81, %c0_82, %c0_83], %305 {strides = array<i32>} : memref<1x4x256xf32, #tpu.memory_space<vmem>>, vector<1x1x256xf32>,
    %306 = arith.mulf %302, %302 : vector<1x256xf32>
    %cst_84 = arith.constant dense<0.000000e+00> : vector<1xf32>
    %307 = vector.multi_reduction <add>, %306, %cst_84 [1] : vector<1x256xf32> to vector<1xf32>
    %308 = vector.shape_cast %307 : vector<1xf32> to vector<1x1xf32>
    %cst_85 = arith.constant 9.99999996E-13 : f32
    %309 = vector.broadcast %cst_85 : f32 to vector<1x1xf32>
    %310 = arith.addf %308, %309 : vector<1x1xf32>
    %311 = math.rsqrt %310 : vector<1x1xf32>
    %312 = vector.broadcast %311 : vector<1x1xf32> to vector<1x256xf32>
    %313 = arith.mulf %302, %312 : vector<1x256xf32>
    %314 = vector.extract_strided_slice %301 {offsets = [1, 0], sizes = [1, 256], strides = [1, 1]} : vector<4x256xf32> to vector<1x256xf32>
    %315 = arith.mulf %314, %313 : vector<1x256xf32>
    %cst_86 = arith.constant dense<0.000000e+00> : vector<1xf32>
    %316 = vector.multi_reduction <add>, %315, %cst_86 [1] : vector<1x256xf32> to vector<1xf32>
    %317 = vector.shape_cast %316 : vector<1xf32> to vector<1x1xf32>
    %318 = vector.broadcast %317 : vector<1x1xf32> to vector<1x256xf32>
    %319 = arith.mulf %313, %318 : vector<1x256xf32>
    %320 = arith.subf %314, %319 : vector<1x256xf32>
    %c0_87 = arith.constant 0 : index
    %c1 = arith.constant 1 : index
    %c0_88 = arith.constant 0 : index
    %321 = vector.load %arg16[%c0_87, %c1, %c0_88] : memref<1x4x256xf32, #tpu.memory_space<vmem>>, vector<1x1x256xf32>
    %322 = vector.shape_cast %321 : vector<1x1x256xf32> to vector<1x256xf32>
    %323 = vector.shape_cast %320 : vector<1x256xf32> to vector<1x1x256xf32>
    tpu.vector_store %arg16[%c0_87, %c1, %c0_88], %323 {strides = array<i32>} : memref<1x4x256xf32, #tpu.memory_space<vmem>>, vector<1x1x256xf32>,
    %324 = arith.mulf %320, %320 : vector<1x256xf32>
    %cst_89 = arith.constant dense<0.000000e+00> : vector<1xf32>
    %325 = vector.multi_reduction <add>, %324, %cst_89 [1] : vector<1x256xf32> to vector<1xf32>
    %326 = vector.shape_cast %325 : vector<1xf32> to vector<1x1xf32>
    %cst_90 = arith.constant 9.99999996E-13 : f32
    %327 = vector.broadcast %cst_90 : f32 to vector<1x1xf32>
    %328 = arith.addf %326, %327 : vector<1x1xf32>
    %329 = math.rsqrt %328 : vector<1x1xf32>
    %330 = vector.broadcast %329 : vector<1x1xf32> to vector<1x256xf32>
    %331 = arith.mulf %320, %330 : vector<1x256xf32>
    %332 = vector.extract_strided_slice %301 {offsets = [2, 0], sizes = [1, 256], strides = [1, 1]} : vector<4x256xf32> to vector<1x256xf32>
    %333 = arith.mulf %332, %313 : vector<1x256xf32>
    %cst_91 = arith.constant dense<0.000000e+00> : vector<1xf32>
    %334 = vector.multi_reduction <add>, %333, %cst_91 [1] : vector<1x256xf32> to vector<1xf32>
    %335 = vector.shape_cast %334 : vector<1xf32> to vector<1x1xf32>
    %336 = vector.broadcast %335 : vector<1x1xf32> to vector<1x256xf32>
    %337 = arith.mulf %313, %336 : vector<1x256xf32>
    %338 = arith.subf %332, %337 : vector<1x256xf32>
    %339 = arith.mulf %338, %331 : vector<1x256xf32>
    %cst_92 = arith.constant dense<0.000000e+00> : vector<1xf32>
    %340 = vector.multi_reduction <add>, %339, %cst_92 [1] : vector<1x256xf32> to vector<1xf32>
    %341 = vector.shape_cast %340 : vector<1xf32> to vector<1x1xf32>
    %342 = vector.broadcast %341 : vector<1x1xf32> to vector<1x256xf32>
    %343 = arith.mulf %331, %342 : vector<1x256xf32>
    %344 = arith.subf %338, %343 : vector<1x256xf32>
    %c0_93 = arith.constant 0 : index
    %c2 = arith.constant 2 : index
    %c0_94 = arith.constant 0 : index
    %345 = vector.load %arg16[%c0_93, %c2, %c0_94] : memref<1x4x256xf32, #tpu.memory_space<vmem>>, vector<1x1x256xf32>
    %346 = vector.shape_cast %345 : vector<1x1x256xf32> to vector<1x256xf32>
    %347 = vector.shape_cast %344 : vector<1x256xf32> to vector<1x1x256xf32>
    tpu.vector_store %arg16[%c0_93, %c2, %c0_94], %347 {strides = array<i32>} : memref<1x4x256xf32, #tpu.memory_space<vmem>>, vector<1x1x256xf32>,
    %348 = arith.mulf %344, %344 : vector<1x256xf32>
    %cst_95 = arith.constant dense<0.000000e+00> : vector<1xf32>
    %349 = vector.multi_reduction <add>, %348, %cst_95 [1] : vector<1x256xf32> to vector<1xf32>
    %350 = vector.shape_cast %349 : vector<1xf32> to vector<1x1xf32>
    %cst_96 = arith.constant 9.99999996E-13 : f32
    %351 = vector.broadcast %cst_96 : f32 to vector<1x1xf32>
    %352 = arith.addf %350, %351 : vector<1x1xf32>
    %353 = math.rsqrt %352 : vector<1x1xf32>
    %354 = vector.broadcast %353 : vector<1x1xf32> to vector<1x256xf32>
    %355 = arith.mulf %344, %354 : vector<1x256xf32>
    %356 = vector.extract_strided_slice %301 {offsets = [3, 0], sizes = [1, 256], strides = [1, 1]} : vector<4x256xf32> to vector<1x256xf32>
    %357 = arith.mulf %356, %313 : vector<1x256xf32>
    %cst_97 = arith.constant dense<0.000000e+00> : vector<1xf32>
    %358 = vector.multi_reduction <add>, %357, %cst_97 [1] : vector<1x256xf32> to vector<1xf32>
    %359 = vector.shape_cast %358 : vector<1xf32> to vector<1x1xf32>
    %360 = vector.broadcast %359 : vector<1x1xf32> to vector<1x256xf32>
    %361 = arith.mulf %313, %360 : vector<1x256xf32>
    %362 = arith.subf %356, %361 : vector<1x256xf32>
    %363 = arith.mulf %362, %331 : vector<1x256xf32>
    %cst_98 = arith.constant dense<0.000000e+00> : vector<1xf32>
    %364 = vector.multi_reduction <add>, %363, %cst_98 [1] : vector<1x256xf32> to vector<1xf32>
    %365 = vector.shape_cast %364 : vector<1xf32> to vector<1x1xf32>
    %366 = vector.broadcast %365 : vector<1x1xf32> to vector<1x256xf32>
    %367 = arith.mulf %331, %366 : vector<1x256xf32>
    %368 = arith.subf %362, %367 : vector<1x256xf32>
    %369 = arith.mulf %368, %355 : vector<1x256xf32>
    %cst_99 = arith.constant dense<0.000000e+00> : vector<1xf32>
    %370 = vector.multi_reduction <add>, %369, %cst_99 [1] : vector<1x256xf32> to vector<1xf32>
    %371 = vector.shape_cast %370 : vector<1xf32> to vector<1x1xf32>
    %372 = vector.broadcast %371 : vector<1x1xf32> to vector<1x256xf32>
    %373 = arith.mulf %355, %372 : vector<1x256xf32>
    %374 = arith.subf %368, %373 : vector<1x256xf32>
    %c0_100 = arith.constant 0 : index
    %c3 = arith.constant 3 : index
    %c0_101 = arith.constant 0 : index
    %375 = vector.load %arg16[%c0_100, %c3, %c0_101] : memref<1x4x256xf32, #tpu.memory_space<vmem>>, vector<1x1x256xf32>
    %376 = vector.shape_cast %375 : vector<1x1x256xf32> to vector<1x256xf32>
    %377 = vector.shape_cast %374 : vector<1x256xf32> to vector<1x1x256xf32>
    tpu.vector_store %arg16[%c0_100, %c3, %c0_101], %377 {strides = array<i32>} : memref<1x4x256xf32, #tpu.memory_space<vmem>>, vector<1x1x256xf32>,
    return
  }
  func.func @transform_0(%arg0: i32) -> (i32, i32, i32) {
    %c0_i32 = arith.constant 0 : i32
    %c0_i32_0 = arith.constant 0 : i32
    %c0_i32_1 = arith.constant 0 : i32
    return %arg0, %c0_i32, %c0_i32_0 : i32, i32, i32
  }
  func.func @transform_1(%arg0: i32) -> (i32, i32, i32) {
    %c0_i32 = arith.constant 0 : i32
    %c0_i32_0 = arith.constant 0 : i32
    %c0_i32_1 = arith.constant 0 : i32
    return %arg0, %c0_i32, %c0_i32_0 : i32, i32, i32
  }
  func.func @transform_2(%arg0: i32) -> (i32, i32) {
    %c0_i32 = arith.constant 0 : i32
    %c0_i32_0 = arith.constant 0 : i32
    %c0_i32_1 = arith.constant 0 : i32
    return %c0_i32, %c0_i32_0 : i32, i32
  }
  func.func @transform_3(%arg0: i32) -> (i32, i32) {
    %c0_i32 = arith.constant 0 : i32
    %c0_i32_0 = arith.constant 0 : i32
    %c0_i32_1 = arith.constant 0 : i32
    return %c0_i32, %c0_i32_0 : i32, i32
  }
  func.func @transform_4(%arg0: i32) -> (i32, i32) {
    %c0_i32 = arith.constant 0 : i32
    %c0_i32_0 = arith.constant 0 : i32
    %c0_i32_1 = arith.constant 0 : i32
    return %c0_i32, %c0_i32_0 : i32, i32
  }
  func.func @transform_5(%arg0: i32) -> (i32, i32) {
    %c0_i32 = arith.constant 0 : i32
    %c0_i32_0 = arith.constant 0 : i32
    %c0_i32_1 = arith.constant 0 : i32
    return %c0_i32, %c0_i32_0 : i32, i32
  }
  func.func @transform_6(%arg0: i32) -> (i32, i32) {
    %c0_i32 = arith.constant 0 : i32
    %c0_i32_0 = arith.constant 0 : i32
    %c0_i32_1 = arith.constant 0 : i32
    return %c0_i32, %c0_i32_0 : i32, i32
  }
  func.func @transform_7(%arg0: i32) -> (i32, i32) {
    %c0_i32 = arith.constant 0 : i32
    %c0_i32_0 = arith.constant 0 : i32
    %c0_i32_1 = arith.constant 0 : i32
    return %c0_i32, %c0_i32_0 : i32, i32
  }
  func.func @transform_8(%arg0: i32) -> (i32, i32) {
    %c0_i32 = arith.constant 0 : i32
    %c0_i32_0 = arith.constant 0 : i32
    %c0_i32_1 = arith.constant 0 : i32
    return %c0_i32, %c0_i32_0 : i32, i32
  }
  func.func @transform_9(%arg0: i32) -> (i32, i32) {
    %c0_i32 = arith.constant 0 : i32
    %c0_i32_0 = arith.constant 0 : i32
    %c0_i32_1 = arith.constant 0 : i32
    return %c0_i32, %c0_i32_0 : i32, i32
  }
  func.func @transform_10(%arg0: i32) -> (i32, i32) {
    %c0_i32 = arith.constant 0 : i32
    %c0_i32_0 = arith.constant 0 : i32
    %c0_i32_1 = arith.constant 0 : i32
    return %c0_i32, %c0_i32_0 : i32, i32
  }
  func.func @transform_11(%arg0: i32) -> (i32, i32) {
    %c0_i32 = arith.constant 0 : i32
    %c0_i32_0 = arith.constant 0 : i32
    %c0_i32_1 = arith.constant 0 : i32
    return %c0_i32, %c0_i32_0 : i32, i32
  }
  func.func @transform_12(%arg0: i32) -> (i32, i32) {
    %c0_i32 = arith.constant 0 : i32
    %c0_i32_0 = arith.constant 0 : i32
    %c0_i32_1 = arith.constant 0 : i32
    return %c0_i32, %c0_i32_0 : i32, i32
  }
  func.func @transform_13(%arg0: i32) -> (i32, i32) {
    %c0_i32 = arith.constant 0 : i32
    %c0_i32_0 = arith.constant 0 : i32
    %c0_i32_1 = arith.constant 0 : i32
    return %c0_i32, %c0_i32_0 : i32, i32
  }
  func.func @transform_14(%arg0: i32) -> (i32, i32) {
    %c0_i32 = arith.constant 0 : i32
    %c0_i32_0 = arith.constant 0 : i32
    %c0_i32_1 = arith.constant 0 : i32
    return %c0_i32, %c0_i32_0 : i32, i32
  }
  func.func @transform_15(%arg0: i32) -> (i32, i32, i32) {
    %c0_i32 = arith.constant 0 : i32
    %c0_i32_0 = arith.constant 0 : i32
    %c0_i32_1 = arith.constant 0 : i32
    return %arg0, %c0_i32, %c0_i32_0 : i32, i32, i32
  }
}

</mosaic_0001>

<bundles_post_ra>
// kernel: forward.1
= control target key start
LH: loop header
LB: loop body
LE: loop exit
PB: predicated region body
PF: predicated region fallthrough
CT: control target
= control target key end

     0   :  { %s2568_s20 = smov 0   ;;  %s3969_s0 = inlined_call_operand.vmem [shape: f32[2,1,256], index: 0, kind: input, shape index: {}]   ;;  %s3970_s1 = inlined_call_operand.vmem [shape: f32[2,1,256], index: 1, kind: input, shape index: {}]   ;;  %s3971_s2 = inlined_call_operand.vmem [shape: f32[9,256], index: 2, kind: input, shape index: {}]   ;;  %s3972_s3 = inlined_call_operand.vmem [shape: bf16[16,18], index: 3, kind: input, shape index: {}]   ;;  %s3973_s4 = inlined_call_operand.vmem [shape: f32[16,1], index: 4, kind: input, shape index: {}]   ;;  %s3974_s5 = inlined_call_operand.vmem [shape: bf16[16,144], index: 5, kind: input, shape index: {}]   ;;  %s3975_s6 = inlined_call_operand.vmem [shape: f32[16,1], index: 6, kind: input, shape index: {}]   ;;  %s3976_s7 = inlined_call_operand.vmem [shape: bf16[1,144], index: 7, kind: input, shape index: {}]   ;;  %s3977_s8 = inlined_call_operand.<no memory space> [shape: f32[1,1], index: 8, kind: input, shape index: {}]   ;;  %s3978_s9 = inlined_call_operand.vmem [shape: bf16[16,27], index: 9, kind: input, shape index: {}]   ;;  %s3979_s10 = inlined_call_operand.vmem [shape: f32[16,1], index: 10, kind: input, shape index: {}]   ;;  %s3980_s11 = inlined_call_operand.vmem [shape: bf16[16,144], index: 11, kind: input, shape index: {}]   ;;  %s3981_s12 = inlined_call_operand.vmem [shape: f32[16,1], index: 12, kind: input, shape index: {}]   ;;  %s3982_s13 = inlined_call_operand.vmem [shape: bf16[4,144], index: 13, kind: input, shape index: {}]   ;;  %s3983_s14 = inlined_call_operand.vmem [shape: f32[4,1], index: 14, kind: input, shape index: {}]   ;;  %s3984_s15 = inlined_call_operand.vmem [shape: f32[2,4,256], index: 15, kind: output, shape index: {}]  }
   0x1   :  { %v20_v0 = vstv %s3977_s8 }
   0x2   :  { %21 = vst [vmem:[#allocation2] sm:$0x1] %v20_v0 }
   0x3 LB: > { %s2395_s21 = sadd.s32 4294967295, %s2472_s20   ;;  %p2399_p0 = scmp.ge.s32.totalorder %s2472_s20, 1  ;;  %s2472_s20 = sphi %s2568_s20, %s27_s20  }
   0x4   : > { %p447_p1 = scmp.lt.s32.totalorder %s2472_s20, 3 }
   0x6   : > { %p448_p2 = pnand %p2399_p0, %p447_p1 }
   0x7   : > { %p498_p3 = scmp.lt.s32.totalorder (!%p448_p2), %s2395_s21, 1  ;;  %s2474_s28 = smov (!%p448_p2), 15  }
   0x8   : > { %451 = sbr.rel (%p448_p2) target bundleno = 3235 (0xca3), region = 80  ;;  %s3989_s29 = smov (!%p448_p2), 16  }
   0x9   : > { %s3987_s30 = smov (!%p448_p2), 17   ;;  %s2477_s16 = smov (!%p448_p2), 1  }
   0xa   : > { %s2478_s17 = smov (!%p448_p2), 127   ;;  %s2479_s18 = smov (!%p448_p2), 113  }
   0xb   : > { %s3985_s19 = smov (!%p448_p2), 111   ;;  %s3997_s22 = smov (!%p448_p2), 16  }
   0xd   : > { %v519_v1 = vlaneseq  ;;  %s4029_s21 = smov (!%p498_p3, %s2395_s21), 1  ;;  %vm3994_vm0 = vcmask 1040384   ;;  %v2481_v13 = vmov 0   ;;  %v767_v14 = vld [vmem:[%s3973_s4] sm:$0xff]  ;;  %v768_v15 = vld [vmem:[%s3973_s4 + $0x8] sm:$0xff]  ;;  %vm735_vm6 = vcmask 1041408  }
   0xe   : > { %s2400_s8 = sshll.u32 %s4029_s21, 1  ;;  %826 = vmatprep.mubr.bf16.mxu0 %v2481_v13  ;;  %2446 = vset.pattern.permute.xlu0 %v2481_v13  ;;  %v2670_v22 = vld [vmem:[%s3971_s2] sm:$0xff]  ;;  %v2675_v23 = vld [vmem:[%s3971_s2 + $0x8] sm:$0xff]  ;;  %vm740_vm7 = vcmask 1042432   ;;  %vm745_vm11 = vcmask 1043456   ;;  %vm750_vm12 = vcmask 1044480  }
   0xf   : > { %v2579_v2 = vshrl.u32 %v519_v1, 7  ;;  %s2591_s24 = scalar_lea.vmem %s3969_s0, %s2400_s8  ;;  %s2596_s27 = scalar_lea.vmem %s3970_s1, %s2400_s8  ;;  %2447 = vset.pattern.permute.xlu1 %v2481_v13  ;;  %v2664_v18 = vand.u32 127, %v519_v1  ;;  %vm755_vm13 = vcmask 1045504   ;;  %vm760_vm14 = vcmask 1046528  }
  0x10   : > { %v516_v5 = vld [vmem:[%s2591_s24] sm:$0x3]  ;;  %s2482_s8 = smov 112   ;;  %vm784_vm15 = vcmask 146432  }
  0x11   : > { %v2583_v3 = vsub.s32 0, %v2579_v2  ;;  %v2586_v4 = vsub.s32 1, %v2579_v2  ;;  %v517_v6 = vld [vmem:[%s2596_s27] sm:$0x3]  ;;  %v594_v21 = vsub.s32 2, %v2579_v2  ;;  %vm589_vm1 = vcmp.lt.s32.totalorder %v2664_v18, 15 }
  0x12   : > { %vm3991_vm2 = vcmp.lt.s32.totalorder %v2664_v18, 16  ;;  %vm551_vm3 = vcmp.lt.s32.totalorder %v2664_v18, 17  ;;  %v613_v26 = vsub.s32 3, %v2579_v2  ;;  %vm3992_vm4 = vcmp.lt.s32.totalorder %v2664_v18, 1 }
  0x13   : > { %v2601_v7 = vrot.slane %v516_v5, %v2583_v3  ;;  %v2604_v8 = vrot.slane %v517_v6, %v2583_v3  ;;  %v2607_v9 = vrot.slane %v516_v5, %v2586_v4  ;;  %v2610_v10 = vrot.slane %v517_v6, %v2586_v4 }
  0x14   : > { %v2682_v27 = vrot.slane %v2670_v22, %v594_v21  ;;  %v2685_v28 = vrot.slane %v2675_v23, %v594_v21  ;;  %v2689_v29 = vrot.slane %v2670_v22, %v2586_v4  ;;  %v2693_v30 = vrot.slane %v2675_v23, %v2586_v4 }
  0x15   : > { %v2615_v11 = vsel %vm3994_vm0, %v2601_v7, %v2604_v8  ;;  %v2624_v12 = vsel %vm3994_vm0, %v2607_v9, %v2610_v10  ;;  %v2697_v31 = vrot.slane %v2670_v22, %v2583_v3  ;;  %v2701_v32 = vrot.slane %v2675_v23, %v2583_v3 }
  0x16   : > { %585 = vrot.lane.b32.xlu1 %v2615_v11, %s2474_s28  ;;  %566 = vrot.lane.b32.xlu0 %v2615_v11, %s3989_s29  ;;  %v634_v33 = vsub.s32 5, %v2579_v2  ;;  %v624_v36 = vpack.c.bf16 %v2624_v12, %v2624_v12  ;;  %v623_v37 = vpack.c.bf16 %v2615_v11, %v2615_v11  ;;  %v2714_v39 = vrot.slane %v2670_v22, %v613_v26 }
  0x17   : > { %v2717_v40 = vrot.slane %v2675_v23, %v613_v26  ;;  %vm629_vm5 = vcmp.lt.s32.totalorder %v2664_v18, 127  ;;  %v653_v42 = vsub.s32 6, %v2579_v2  ;;  %vm648_vm8 = vcmp.lt.s32.totalorder %v2664_v18, 113 }
  0x18   : > { %v2734_v50 = vrot.slane %v2670_v22, %v634_v33  ;;  %v2739_v52 = vrot.slane %v2675_v23, %v634_v33  ;;  %v2741_v53 = vrot.slane %v624_v36, 4  ;;  %v2743_v54 = vrot.slane %v623_v37, 4 }
  0x19   : > { %v2752_v62 = vrot.slane %v2670_v22, %v653_v42  ;;  %v2755_v63 = vrot.slane %v2675_v23, %v653_v42  ;;  %vm3993_vm9 = vcmp.lt.s32.totalorder %v2664_v18, 111  ;;  %vm667_vm10 = vcmp.lt.s32.totalorder %v2664_v18, 112 }
  0x1a   : > { %587 = vrot.lane.b32.xlu1 %v2624_v12, %s2474_s28  ;;  %568 = vrot.lane.b32.xlu0 %v2624_v12, %s3989_s29 }
  0x1e   : > { %547 = vrot.lane.b32.xlu1 %v2624_v12, %s3987_s30  ;;  %545 = vrot.lane.b32.xlu0 %v2615_v11, %s3987_s30  ;;  %s3995_s30 = smov 17  }
  0x22   : > { %606 = vrot.lane.b32.xlu1 %v2624_v12, %s2477_s16  ;;  %604 = vrot.lane.b32.xlu0 %v2615_v11, %s2477_s16 }
  0x26   : > { %627 = vrot.lane.b32.xlu1 %v2624_v12, %s2478_s17  ;;  %625 = vrot.lane.b32.xlu0 %v2615_v11, %s2478_s17 }
  0x2a   : > { %646 = vrot.lane.b32.xlu1 %v2624_v12, %s2479_s18  ;;  %644 = vrot.lane.b32.xlu0 %v2615_v11, %s2479_s18 }
  0x2e   : > { %684 = vrot.lane.b32.xlu1 %v2624_v12, %s3985_s19  ;;  %682 = vrot.lane.b32.xlu0 %v2615_v11, %s3985_s19  ;;  %s3996_s19 = smov 111  }
  0x32   : > { %665 = vrot.lane.b32.xlu1 %v2624_v12, %s2482_s8  ;;  %663 = vrot.lane.b32.xlu0 %v2615_v11, %s2482_s8 }
  0x36   : > { %771 = vperm.xlu0 %2446, %v767_v14   ;;  %776 = vperm.xlu1 %2447, %v768_v15   ;;  %v672_v14 = vsub.s32 7, %v2579_v2 }
  0x38   : > { %v2774_v42 = vrot.slane %v2670_v22, %v672_v14 }
  0x88   : > { %v586_v16 = vpop.permute.xlu1 %585  ;;  %v567_v17 = vpop.permute.xlu0 %566 }
  0x8c   : > { %v588_v19 = vpop.permute.xlu1 %587  ;;  %v569_v20 = vpop.permute.xlu0 %568 }
  0x8d   : > { %v571_v34 = vsel %vm3991_vm2, %v567_v17, %v569_v20  ;;  %v572_v35 = vsel %vm3991_vm2, %v569_v20, %v567_v17  ;;  %v591_v43 = vsel %vm589_vm1, %v588_v19, %v586_v16  ;;  %v590_v51 = vsel %vm589_vm1, %v586_v16, %v588_v19 }
  0x8e   : > { %v581_v47 = vmul.f32 %v2689_v29, %v572_v35  ;;  %v582_v48 = vmul.f32 %v2693_v30, %v571_v34  ;;  %v600_v55 = vmul.f32 %v2682_v27, %v591_v43  ;;  %v601_v0 = vmul.f32 %v2685_v28, %v590_v51 }
  0x8f   : > { %v2777_v43 = vrot.slane %v2675_v23, %v672_v14 }
  0x90   : > { %v548_v24 = vpop.permute.xlu1 %547  ;;  %v546_v25 = vpop.permute.xlu0 %545  ;;  %v583_v5 = vpack.c.bf16 %v581_v47, %v581_v47  ;;  %v584_v6 = vpack.c.bf16 %v582_v48, %v582_v48  ;;  %v602_v15 = vpack.c.bf16 %v600_v55, %v600_v55  ;;  %v603_v34 = vpack.c.bf16 %v601_v0, %v601_v0 }
  0x91   : > { %v552_v44 = vsel %vm551_vm3, %v546_v25, %v548_v24  ;;  %v553_v45 = vsel %vm551_vm3, %v548_v24, %v546_v25 }
  0x92   : > { %v562_v56 = vmul.f32 %v2697_v31, %v553_v45  ;;  %v563_v57 = vmul.f32 %v2701_v32, %v552_v44  ;;  %v703_v35 = vrot.slane %v583_v5, 7  ;;  %v704_v36 = vrot.slane %v584_v6, 7  ;;  %v2782_v44 = vld [vmem:[%s3971_s2 + $0x18] ss:$0 sm:$0xff]  ;;  %v2787_v45 = vld [vmem:[%s3971_s2 + $0x10] ss:$0 sm:$0xff] }
  0x94   : > { %v607_v38 = vpop.permute.xlu1 %606  ;;  %v605_v41 = vpop.permute.xlu0 %604  ;;  %v564_v16 = vpack.c.bf16 %v562_v56, %v562_v56  ;;  %v565_v17 = vpack.c.bf16 %v563_v57, %v563_v57 }
  0x95   : > { %v610_v46 = vsel %vm3992_vm4, %v607_v38, %v605_v41  ;;  %v609_v49 = vsel %vm3992_vm4, %v605_v41, %v607_v38 }
  0x96   : > { %v619_v58 = vmul.f32 %v2714_v39, %v610_v46  ;;  %v620_v61 = vmul.f32 %v2717_v40, %v609_v49  ;;  %v707_v46 = vrot.slane %v602_v15, 6  ;;  %v731_v47 = vsel %vm3994_vm0, %v564_v16, %v703_v35 }
  0x97   : > { %v734_v48 = vsel %vm3994_vm0, %v565_v17, %v704_v36 }
  0x98   : > { %v628_v59 = vpop.permute.xlu1 %627  ;;  %v626_v60 = vpop.permute.xlu0 %625  ;;  %v621_v19 = vpack.c.bf16 %v619_v58, %v619_v58  ;;  %v622_v24 = vpack.c.bf16 %v620_v61, %v620_v61  ;;  %v708_v58 = vrot.slane %v603_v34, 6  ;;  %v737_v0 = vsel %vm735_vm6, %v731_v47, %v707_v46 }
  0x99   : > { %v630_v11 = vsel %vm629_vm5, %v626_v60, %v628_v59  ;;  %v631_v12 = vsel %vm629_vm5, %v628_v59, %v626_v60 }
  0x9a   : > { %v640_v25 = vmul.f32 %v2734_v50, %v630_v11  ;;  %v641_v37 = vmul.f32 %v2739_v52, %v631_v12  ;;  %v711_v22 = vrot.slane %v621_v19, 5  ;;  %v712_v23 = vrot.slane %v622_v24, 5 }
  0x9b   : > { %v739_v11 = vsel %vm735_vm6, %v734_v48, %v708_v58 }
  0x9c   : > { %v647_v20 = vpop.permute.xlu1 %646  ;;  %v645_v21 = vpop.permute.xlu0 %644  ;;  %v642_v55 = vpack.c.bf16 %v640_v25, %v640_v25  ;;  %v643_v59 = vpack.c.bf16 %v641_v37, %v641_v37  ;;  %v742_v12 = vsel %vm740_vm7, %v737_v0, %v711_v22  ;;  %v744_v19 = vsel %vm740_vm7, %v739_v11, %v712_v23 }
  0x9d   : > { %v649_v26 = vsel %vm648_vm8, %v645_v21, %v647_v20  ;;  %v650_v33 = vsel %vm648_vm8, %v647_v20, %v645_v21  ;;  %v747_v46 = vsel %vm745_vm11, %v742_v12, %v2743_v54 }
  0x9e   : > { %v659_v38 = vmul.f32 %v2752_v62, %v649_v26  ;;  %v660_v41 = vmul.f32 %v2755_v63, %v650_v33  ;;  %v719_v20 = vrot.slane %v642_v55, 3  ;;  %v720_v25 = vrot.slane %v643_v59, 3 }
  0xa0   : > { %v685_v49 = vpop.permute.xlu1 %684  ;;  %v683_v51 = vpop.permute.xlu0 %682  ;;  %v661_v5 = vpack.c.bf16 %v659_v38, %v659_v38  ;;  %v662_v6 = vpack.c.bf16 %v660_v41, %v660_v41  ;;  %v749_v41 = vsel %vm745_vm11, %v744_v19, %v2741_v53  ;;  %v2448_v53 = vld [vmem:[%s3972_s3] sm:$0xff]  }
  0xa1   : > { %v687_v56 = vsel %vm3993_vm9, %v683_v51, %v685_v49  ;;  %v688_v57 = vsel %vm3993_vm9, %v685_v49, %v683_v51  ;;  %v754_v22 = vsel %vm750_vm12, %v749_v41, %v720_v25  ;;  %v752_v49 = vsel %vm750_vm12, %v747_v46, %v719_v20  ;;  %v2451_v20 = vld [vmem:[%s3974_s5 + $0x4] ss:$8 sps:$4 sm:$0xff]  }
  0xa2   : > { %v698_v60 = vmul.f32 %v2782_v44, %v688_v57  ;;  %v697_v61 = vmul.f32 %v2787_v45, %v687_v56  ;;  %v723_v35 = vrot.slane %v661_v5, 2  ;;  %v724_v36 = vrot.slane %v662_v6, 2 }
  0xa4   : > { %v666_v14 = vpop.permute.xlu1 %665  ;;  %v664_v15 = vpop.permute.xlu0 %663  ;;  %v700_v16 = vpack.c.bf16 %v698_v60, %v698_v60  ;;  %v699_v17 = vpack.c.bf16 %v697_v61, %v697_v61  ;;  %v759_v51 = vsel %vm755_vm13, %v754_v22, %v724_v36  ;;  %v757_v23 = vsel %vm755_vm13, %v752_v49, %v723_v35 }
  0xa5   : > { %v668_v21 = vsel %vm667_vm10, %v664_v15, %v666_v14  ;;  %v669_v24 = vsel %vm667_vm10, %v666_v14, %v664_v15 }
  0xa6   : > { %v678_v26 = vmul.f32 %v2774_v42, %v668_v21  ;;  %v679_v33 = vmul.f32 %v2777_v43, %v669_v24  ;;  %2407 = vmatprep.subr.msk.bf16.mxu0 %vm3994_vm0, %v700_v16  ;;  %v789_v34 = vsel %vm3994_vm0, %v699_v17, 0  ;;  %v989_v21 = vld [vmem:[%s3975_s6] sm:$0xff]  ;;  %v990_v24 = vld [vmem:[%s3975_s6 + $0x8] sm:$0xff] }
  0xa7   : > { %807 = vmatpush1.bf16.msra.mxu0 %v789_v34 }
  0xa8   : > { %v680_v37 = vpack.c.bf16 %v678_v26, %v678_v26  ;;  %v681_v38 = vpack.c.bf16 %v679_v33, %v679_v33 }
  0xaa   : > { %v727_v47 = vrot.slane %v680_v37, 1  ;;  %v728_v48 = vrot.slane %v681_v38, 1 }
  0xac   : > { %v765_v55 = vsel %vm760_vm14, %v759_v51, %v728_v48  ;;  %v762_v56 = vsel %vm760_vm14, %v757_v23, %v727_v47  ;;  %vm1010_vm14 = vcmask 130048  }
  0xad   : > { %808 = vmatprep.subr.bf16.mxu0 %v765_v55  ;;  %2411 = vmatprep.mubr.msk.bf16.mxu1 %vm1010_vm14, %v2451_v20 }
  0xae   : > { %809 = vmatpush1.bf16.msra.mxu0 %v762_v56 }
  0xb1   : > { %2408 = vmatmul.mubr.msk.bf16.vlgmr.msra.gmra.mxu0 %vm784_vm15, %v2448_v53  ;;  %v772_v54 = vpop.permute.xlu0 %771  ;;  %v777_v60 = vpop.permute.xlu1 %776  ;;  %vm1545_vm15 = vsmask.f32 2304 }
 0x171   : > { %v828_v57 = vpop.f32.mrf.mxu0 }
 0x172   : > { %v829_v58 = vadd.f32 %v828_v57, %v772_v54 }
 0x173   : > { %v830_v59 = vpop.f32.mrf.mxu0 }
 0x174   : > { %v2820_v61 = vmax.f32 %v829_v58, 0.0  ;;  %v831_v5 = vadd.f32 %v830_v59, %v772_v54 }
 0x175   : > { %v832_v0 = vpop.f32.mrf.mxu0 }
 0x176   : > { %v833_v6 = vadd.f32 %v832_v0, %v777_v60  ;;  %953 = vrot.lane.b32.xlu1 %v2820_v61, %s2482_s8  ;;  %v2826_v15 = vmax.f32 %v831_v5, 0.0 }
 0x177   : > { %v834_v11 = vpop.f32.mrf.mxu0 }
 0x178   : > { %v2824_v12 = vmax.f32 %v833_v6, 0.0  ;;  %v835_v14 = vadd.f32 %v834_v11, %v777_v60 }
 0x17a   : > { %v2828_v16 = vmax.f32 %v835_v14, 0.0  ;;  %955 = vrot.lane.b32.xlu0 %v2824_v12, %s2482_s8  ;;  %935 = vrot.lane.b32.xlu1 %v2820_v61, %s2479_s18  ;;  %v915_v17 = vpack.c.bf16 %v2824_v12, %v2820_v61 }
 0x17c   : > { %v916_v19 = vpack.c.bf16 %v2828_v16, %v2826_v15 }
 0x17e   : > { %937 = vrot.lane.b32.xlu0 %v2824_v12, %s2479_s18  ;;  %917 = vrot.lane.b32.xlu1 %v2820_v61, %s2478_s17 }
 0x182   : > { %919 = vrot.lane.b32.xlu0 %v2824_v12, %s2478_s17  ;;  %897 = vrot.lane.b32.xlu1 %v2820_v61, %s2477_s16 }
 0x186   : > { %899 = vrot.lane.b32.xlu0 %v2824_v12, %s2477_s16  ;;  %879 = vrot.lane.b32.xlu1 %v2820_v61, %s2474_s28 }
 0x18a   : > { %881 = vrot.lane.b32.xlu0 %v2824_v12, %s2474_s28  ;;  %861 = vrot.lane.b32.xlu1 %v2820_v61, %s3989_s29 }
 0x18e   : > { %863 = vrot.lane.b32.xlu0 %v2824_v12, %s3989_s29  ;;  %843 = vrot.lane.b32.xlu1 %v2820_v61, %s3995_s30 }
 0x192   : > { %845 = vrot.lane.b32.xlu0 %v2824_v12, %s3995_s30  ;;  %957 = vrot.lane.b32.xlu1 %v2826_v15, %s2482_s8 }
 0x196   : > { %959 = vrot.lane.b32.xlu0 %v2828_v16, %s2482_s8  ;;  %939 = vrot.lane.b32.xlu1 %v2826_v15, %s2479_s18 }
 0x19a   : > { %941 = vrot.lane.b32.xlu0 %v2828_v16, %s2479_s18  ;;  %921 = vrot.lane.b32.xlu1 %v2826_v15, %s2478_s17 }
 0x19e   : > { %923 = vrot.lane.b32.xlu0 %v2828_v16, %s2478_s17  ;;  %971 = vrot.lane.b32.xlu1 %v2820_v61, %s3996_s19 }
 0x1a2   : > { %973 = vrot.lane.b32.xlu0 %v2824_v12, %s3996_s19  ;;  %901 = vrot.lane.b32.xlu1 %v2826_v15, %s2477_s16 }
 0x1a6   : > { %903 = vrot.lane.b32.xlu0 %v2828_v16, %s2477_s16  ;;  %883 = vrot.lane.b32.xlu1 %v2826_v15, %s2474_s28 }
 0x1aa   : > { %885 = vrot.lane.b32.xlu0 %v2828_v16, %s2474_s28  ;;  %865 = vrot.lane.b32.xlu1 %v2826_v15, %s3989_s29 }
 0x1ae   : > { %867 = vrot.lane.b32.xlu0 %v2828_v16, %s3989_s29  ;;  %847 = vrot.lane.b32.xlu1 %v2826_v15, %s3995_s30 }
 0x1b2   : > { %849 = vrot.lane.b32.xlu0 %v2828_v16, %s3995_s30  ;;  %975 = vrot.lane.b32.xlu1 %v2826_v15, %s3996_s19 }
 0x1b6   : > { %977 = vrot.lane.b32.xlu0 %v2828_v16, %s3996_s19  ;;  %993 = vperm.xlu1 %2447, %v989_v21  }
 0x1ba   : > { %998 = vperm.xlu0 %2446, %v990_v24  }
 0x1e8   : > { %v954_v25 = vpop.permute.xlu1 %953 }
 0x1ec   : > { %v956_v26 = vpop.permute.xlu0 %955  ;;  %v936_v33 = vpop.permute.xlu1 %935 }
 0x1f0   : > { %v938_v34 = vpop.permute.xlu0 %937  ;;  %v918_v35 = vpop.permute.xlu1 %917 }
 0x1f4   : > { %v920_v36 = vpop.permute.xlu0 %919  ;;  %v898_v37 = vpop.permute.xlu1 %897 }
 0x1f8   : > { %v900_v38 = vpop.permute.xlu0 %899  ;;  %v2906_v41 = vpop.permute.xlu1 %879 }
 0x1fc   : > { %v2908_v46 = vpop.permute.xlu0 %881  ;;  %v2910_v47 = vpop.permute.xlu1 %861 }
 0x200   : > { %v2912_v48 = vpop.permute.xlu0 %863  ;;  %v2914_v22 = vpop.permute.xlu1 %843 }
 0x204   : > { %v2916_v49 = vpop.permute.xlu0 %845  ;;  %v958_v51 = vpop.permute.xlu1 %957 }
 0x205   : > { %v961_v23 = vsel %vm667_vm10, %v954_v25, %v958_v51  ;;  %v963_v55 = vsel %vm667_vm10, %v958_v51, %v954_v25 }
 0x206   : > { %v966_v58 = vmul.f32 %v963_v55, %v2777_v43  ;;  %v965_v60 = vmul.f32 %v961_v23, %v2774_v42 }
 0x208   : > { %v960_v56 = vpop.permute.xlu0 %959  ;;  %v940_v53 = vpop.permute.xlu1 %939 }
 0x209   : > { %v962_v54 = vsel %vm667_vm10, %v956_v26, %v960_v56  ;;  %v964_v57 = vsel %vm667_vm10, %v960_v56, %v956_v26  ;;  %v943_v5 = vsel %vm648_vm8, %v936_v33, %v940_v53  ;;  %v945_v6 = vsel %vm648_vm8, %v940_v53, %v936_v33 }
 0x20a   : > { %v968_v59 = vmul.f32 %v964_v57, %v2777_v43  ;;  %v967_v0 = vmul.f32 %v962_v54, %v2774_v42  ;;  %v947_v26 = vmul.f32 %v943_v5, %v2752_v62  ;;  %v948_v51 = vmul.f32 %v945_v6, %v2755_v63 }
 0x20c   : > { %v942_v11 = vpop.permute.xlu0 %941  ;;  %v922_v14 = vpop.permute.xlu1 %921  ;;  %v970_v20 = vpack.c.bf16 %v968_v59, %v966_v58  ;;  %v969_v21 = vpack.c.bf16 %v967_v0, %v965_v60 }
 0x20d   : > { %v944_v24 = vsel %vm648_vm8, %v938_v34, %v942_v11  ;;  %v946_v25 = vsel %vm648_vm8, %v942_v11, %v938_v34  ;;  %v925_v33 = vsel %vm629_vm5, %v918_v35, %v922_v14  ;;  %v927_v56 = vsel %vm629_vm5, %v922_v14, %v918_v35 }
 0x20e   : > { %v949_v23 = vmul.f32 %v944_v24, %v2752_v62  ;;  %v950_v55 = vmul.f32 %v946_v25, %v2755_v63  ;;  %1014 = vmatprep.subr.bf16.mxu1 %v970_v20  ;;  %v929_v60 = vmul.f32 %v925_v33, %v2734_v50  ;;  %v930_v0 = vmul.f32 %v927_v56, %v2739_v52 }
 0x20f   : > { %1015 = vmatpush1.bf16.msra.mxu1 %v969_v21 }
 0x210   : > { %v924_v53 = vpop.permute.xlu0 %923  ;;  %v2946_v54 = vpop.permute.xlu1 %971  ;;  %v952_v34 = vpack.c.bf16 %v950_v55, %v948_v51  ;;  %v951_v57 = vpack.c.bf16 %v949_v23, %v947_v26 }
 0x211   : > { %v926_v58 = vsel %vm629_vm5, %v920_v36, %v924_v53  ;;  %v928_v59 = vsel %vm629_vm5, %v924_v53, %v920_v36 }
 0x212   : > { %v931_v5 = vmul.f32 %v926_v58, %v2734_v50  ;;  %v932_v35 = vmul.f32 %v928_v59, %v2739_v52  ;;  %1016 = vmatprep.subr.bf16.mxu1 %v952_v34 }
 0x213   : > { %1017 = vmatpush1.bf16.msra.mxu1 %v951_v57 }
 0x214   : > { %v2956_v6 = vpop.permute.xlu0 %973  ;;  %v902_v11 = vpop.permute.xlu1 %901  ;;  %v934_v14 = vpack.c.bf16 %v932_v35, %v930_v0  ;;  %v933_v20 = vpack.c.bf16 %v931_v5, %v929_v60 }
 0x215   : > { %v905_v21 = vsel %vm3992_vm4, %v898_v37, %v902_v11  ;;  %v907_v36 = vsel %vm3992_vm4, %v902_v11, %v898_v37 }
 0x216   : > { %1018 = vmatprep.subr.bf16.mxu1 %v934_v14  ;;  %v909_v23 = vmul.f32 %v907_v36, %v2714_v39  ;;  %v910_v55 = vmul.f32 %v905_v21, %v2717_v40 }
 0x217   : > { %1019 = vmatpush1.bf16.msra.mxu1 %v933_v20 }
 0x218   : > { %v904_v24 = vpop.permute.xlu0 %903  ;;  %1020 = vmatprep.subr.bf16.mxu1 %v916_v19  ;;  %v884_v25 = vpop.permute.xlu1 %883 }
 0x219   : > { %v906_v26 = vsel %vm3992_vm4, %v900_v38, %v904_v24  ;;  %v908_v51 = vsel %vm3992_vm4, %v904_v24, %v900_v38  ;;  %v887_v15 = vsel %vm589_vm1, %v2906_v41, %v884_v25  ;;  %v889_v16 = vsel %vm589_vm1, %v884_v25, %v2906_v41 }
 0x21a   : > { %v911_v33 = vmul.f32 %v908_v51, %v2714_v39  ;;  %v912_v37 = vmul.f32 %v906_v26, %v2717_v40  ;;  %v891_v58 = vmul.f32 %v889_v16, %v2682_v27  ;;  %v892_v41 = vmul.f32 %v887_v15, %v2685_v28 }
 0x21b   : > { %1021 = vmatpush1.bf16.msra.mxu1 %v915_v17 }
 0x21c   : > { %v886_v19 = vpop.permute.xlu0 %885  ;;  %v866_v38 = vpop.permute.xlu1 %865  ;;  %v914_v56 = vpack.c.bf16 %v912_v37, %v910_v55  ;;  %v913_v53 = vpack.c.bf16 %v911_v33, %v909_v23 }
 0x21d   : > { %v888_v34 = vsel %vm589_vm1, %v2908_v46, %v886_v19  ;;  %v890_v57 = vsel %vm589_vm1, %v886_v19, %v2908_v46  ;;  %v869_v12 = vsel %vm3991_vm2, %v2910_v47, %v866_v38  ;;  %v871_v17 = vsel %vm3991_vm2, %v866_v38, %v2910_v47 }
 0x21e   : > { %v893_v59 = vmul.f32 %v890_v57, %v2682_v27  ;;  %v894_v61 = vmul.f32 %v888_v34, %v2685_v28  ;;  %1022 = vmatprep.subr.bf16.mxu1 %v914_v56  ;;  %v873_v14 = vmul.f32 %v871_v17, %v2689_v29  ;;  %v874_v20 = vmul.f32 %v869_v12, %v2693_v30  ;;  %v2449_v12 = vld [vmem:[%s3974_s5] ss:$8 sps:$4 sm:$0xff]  }
 0x21f   : > { %1023 = vmatpush1.bf16.msra.mxu1 %v913_v53 }
 0x220   : > { %v868_v60 = vpop.permute.xlu0 %867  ;;  %v848_v46 = vpop.permute.xlu1 %847  ;;  %v896_v0 = vpack.c.bf16 %v894_v61, %v892_v41  ;;  %v895_v5 = vpack.c.bf16 %v893_v59, %v891_v58 }
 0x221   : > { %v870_v35 = vsel %vm3991_vm2, %v2912_v48, %v868_v60  ;;  %v872_v11 = vsel %vm3991_vm2, %v868_v60, %v2912_v48  ;;  %v851_v36 = vsel %vm551_vm3, %v2914_v22, %v848_v46  ;;  %v853_v24 = vsel %vm551_vm3, %v848_v46, %v2914_v22 }
 0x222   : > { %v875_v21 = vmul.f32 %v872_v11, %v2689_v29  ;;  %v876_v47 = vmul.f32 %v870_v35, %v2693_v30  ;;  %1024 = vmatprep.subr.bf16.mxu1 %v896_v0  ;;  %v855_v33 = vmul.f32 %v853_v24, %v2697_v31  ;;  %v856_v37 = vmul.f32 %v851_v36, %v2701_v32 }
 0x223   : > { %1025 = vmatpush1.bf16.msra.mxu1 %v895_v5 }
 0x224   : > { %v850_v25 = vpop.permute.xlu0 %849  ;;  %v976_v48 = vpop.permute.xlu1 %975  ;;  %v878_v26 = vpack.c.bf16 %v876_v47, %v874_v20  ;;  %v877_v51 = vpack.c.bf16 %v875_v21, %v873_v14 }
 0x225   : > { %v852_v23 = vsel %vm551_vm3, %v2916_v49, %v850_v25  ;;  %v854_v55 = vsel %vm551_vm3, %v850_v25, %v2916_v49  ;;  %v979_v16 = vsel %vm3993_vm9, %v2946_v54, %v976_v48  ;;  %v981_v19 = vsel %vm3993_vm9, %v976_v48, %v2946_v54 }
 0x226   : > { %v857_v15 = vmul.f32 %v854_v55, %v2697_v31  ;;  %v858_v22 = vmul.f32 %v852_v23, %v2701_v32  ;;  %1026 = vmatprep.subr.bf16.mxu1 %v878_v26  ;;  %v983_v57 = vmul.f32 %v2787_v45, %v979_v16  ;;  %v984_v58 = vmul.f32 %v2782_v44, %v981_v19  ;;  %v3113_v23 = vld.sshfl [vmem:[%s3976_s7] sm:$0x11 pattern:$0x75316420] }
 0x227   : > { %1027 = vmatpush1.bf16.msra.mxu1 %v877_v51  ;;  %v2483_v48 = vmov 1966171168   ;;  %v1226_v55 = vcombine.high %v3113_v23, %v3113_v23 }
 0x228   : > { %v978_v38 = vpop.permute.xlu0 %977  ;;  %v860_v49 = vpack.c.bf16 %v858_v22, %v856_v37  ;;  %v859_v56 = vpack.c.bf16 %v857_v15, %v855_v33  ;;  %v1228_v26 = vunpack.c.l.s4 %v2483_v48  ;;  %v1208_v15 = vld [vmem:[#allocation2] sm:$0x1] }
 0x229   : > { %v980_v53 = vsel %vm3993_vm9, %v2956_v6, %v978_v38  ;;  %v982_v34 = vsel %vm3993_vm9, %v978_v38, %v2956_v6 }
 0x22a   : > { %v985_v41 = vmul.f32 %v2787_v45, %v980_v53  ;;  %v986_v54 = vmul.f32 %v2782_v44, %v982_v34  ;;  %1028 = vmatprep.subr.bf16.mxu1 %v860_v49  ;;  %v1229_v51 = vunpack.c.0.s8 %v1228_v26 }
 0x22b   : > { %1029 = vmatpush1.bf16.msra.mxu1 %v859_v56 }
 0x22c   : > { %v988_v59 = vpack.c.bf16 %v986_v54, %v984_v58  ;;  %v987_v61 = vpack.c.bf16 %v985_v41, %v983_v57  ;;  %v3122_v33 = vsub.s32 %v1229_v51, %v2579_v2 }
 0x22e   : > { %1044 = vmatprep.subr.bf16.mxu1 %v988_v59  ;;  %v1240_v37 = vrot.slane %v1226_v55, %v3122_v33 }
 0x22f   : > { %1045 = vmatpush2.bf16.msra.mxu1 %v987_v61 }
 0x230   : > { %2413 = vmatprep.mubr.msk.bf16.mxu0 %vm1010_vm14, %v1240_v37 }
 0x231   : > { %v994_v6 = vpop.permute.xlu1 %993 }
 0x232   : > { %1047 = vmatmul.mubr.bf16.vlgmr.msra.gmra.mxu1 %v2449_v12 }
 0x233   : > { %1614 = vmatprep.mubr.bf16.mxu1 %v2481_v13 }
 0x235   : > { %v999_v5 = vpop.permute.xlu0 %998 }
 0x2f2   : > { %v1048_v17 = vpop.f32.mrf.mxu1 }
 0x2f3   : > { %v1049_v60 = vadd.f32 %v1048_v17, %v994_v6 }
 0x2f4   : > { %v1050_v46 = vpop.f32.mrf.mxu1 }
 0x2f5   : > { %v3044_v0 = vmax.f32 %v1049_v60, 0.0  ;;  %v1051_v11 = vadd.f32 %v1050_v46, %v994_v6 }
 0x2f6   : > { %v1052_v35 = vpop.f32.mrf.mxu1 }
 0x2f7   : > { %v1053_v14 = vadd.f32 %v1052_v35, %v999_v5  ;;  %1172 = vrot.lane.b32.xlu1 %v3044_v0, %s2482_s8  ;;  %v3050_v36 = vmax.f32 %v1051_v11, 0.0 }
 0x2f8   : > { %v1054_v20 = vpop.f32.mrf.mxu1 }
 0x2f9   : > { %v3048_v21 = vmax.f32 %v1053_v14, 0.0  ;;  %v1055_v47 = vadd.f32 %v1054_v20, %v999_v5 }
 0x2fb   : > { %v3052_v13 = vmax.f32 %v1055_v47, 0.0  ;;  %1174 = vrot.lane.b32.xlu0 %v3048_v21, %s2482_s8  ;;  %1154 = vrot.lane.b32.xlu1 %v3044_v0, %s2479_s18  ;;  %v1134_v24 = vpack.c.bf16 %v3048_v21, %v3044_v0 }
 0x2fd   : > { %v1135_v25 = vpack.c.bf16 %v3052_v13, %v3050_v36 }
 0x2ff   : > { %1156 = vrot.lane.b32.xlu0 %v3048_v21, %s2479_s18  ;;  %1136 = vrot.lane.b32.xlu1 %v3044_v0, %s2478_s17 }
 0x303   : > { %1138 = vrot.lane.b32.xlu0 %v3048_v21, %s2478_s17  ;;  %1116 = vrot.lane.b32.xlu1 %v3044_v0, %s2477_s16 }
 0x307   : > { %1118 = vrot.lane.b32.xlu0 %v3048_v21, %s2477_s16  ;;  %1098 = vrot.lane.b32.xlu1 %v3044_v0, %s2474_s28 }
 0x30b   : > { %1100 = vrot.lane.b32.xlu0 %v3048_v21, %s2474_s28  ;;  %1080 = vrot.lane.b32.xlu1 %v3044_v0, %s3997_s22 }
 0x30f   : > { %1082 = vrot.lane.b32.xlu0 %v3048_v21, %s3997_s22  ;;  %1062 = vrot.lane.b32.xlu1 %v3044_v0, %s3995_s30 }
 0x313   : > { %1064 = vrot.lane.b32.xlu0 %v3048_v21, %s3995_s30  ;;  %1176 = vrot.lane.b32.xlu1 %v3050_v36, %s2482_s8 }
 0x317   : > { %1178 = vrot.lane.b32.xlu0 %v3052_v13, %s2482_s8  ;;  %1158 = vrot.lane.b32.xlu1 %v3050_v36, %s2479_s18 }
 0x31b   : > { %1160 = vrot.lane.b32.xlu0 %v3052_v13, %s2479_s18  ;;  %1140 = vrot.lane.b32.xlu1 %v3050_v36, %s2478_s17 }
 0x31f   : > { %1142 = vrot.lane.b32.xlu0 %v3052_v13, %s2478_s17  ;;  %1190 = vrot.lane.b32.xlu1 %v3044_v0, %s3996_s19 }
 0x323   : > { %1192 = vrot.lane.b32.xlu0 %v3048_v21, %s3996_s19  ;;  %1120 = vrot.lane.b32.xlu1 %v3050_v36, %s2477_s16 }
 0x327   : > { %1122 = vrot.lane.b32.xlu0 %v3052_v13, %s2477_s16  ;;  %1102 = vrot.lane.b32.xlu1 %v3050_v36, %s2474_s28 }
 0x32b   : > { %1104 = vrot.lane.b32.xlu0 %v3052_v13, %s2474_s28  ;;  %1084 = vrot.lane.b32.xlu1 %v3050_v36, %s3997_s22 }
 0x32f   : > { %1086 = vrot.lane.b32.xlu0 %v3052_v13, %s3997_s22  ;;  %1066 = vrot.lane.b32.xlu1 %v3050_v36, %s3995_s30 }
 0x333   : > { %1068 = vrot.lane.b32.xlu0 %v3052_v13, %s3995_s30  ;;  %1194 = vrot.lane.b32.xlu1 %v3050_v36, %s3996_s19 }
 0x337   : > { %1196 = vrot.lane.b32.xlu0 %v3052_v13, %s3996_s19  ;;  %1211 = vperm.xlu1 %2447, %v1208_v15  }
 0x369   : > { %v1173_v22 = vpop.permute.xlu1 %1172 }
 0x36d   : > { %v1175_v16 = vpop.permute.xlu0 %1174  ;;  %v1155_v19 = vpop.permute.xlu1 %1154 }
 0x371   : > { %v1157_v2 = vpop.permute.xlu0 %1156  ;;  %v1137_v38 = vpop.permute.xlu1 %1136 }
 0x375   : > { %v1139_v49 = vpop.permute.xlu0 %1138  ;;  %v1117_v56 = vpop.permute.xlu1 %1116 }
 0x379   : > { %v1119_v53 = vpop.permute.xlu0 %1118  ;;  %v3132_v34 = vpop.permute.xlu1 %1098 }
 0x37d   : > { %v3134_v57 = vpop.permute.xlu0 %1100  ;;  %v3136_v58 = vpop.permute.xlu1 %1080 }
 0x381   : > { %v3138_v41 = vpop.permute.xlu0 %1082  ;;  %v3140_v54 = vpop.permute.xlu1 %1062 }
 0x385   : > { %v3142_v59 = vpop.permute.xlu0 %1064  ;;  %v1177_v61 = vpop.permute.xlu1 %1176 }
 0x386   : > { %v1180_v12 = vsel %vm667_vm10, %v1173_v22, %v1177_v61  ;;  %v1182_v6 = vsel %vm667_vm10, %v1177_v61, %v1173_v22 }
 0x387   : > { %v1184_v35 = vmul.f32 %v1180_v12, %v2774_v42  ;;  %v1185_v11 = vmul.f32 %v1182_v6, %v2777_v43 }
 0x389   : > { %v1179_v17 = vpop.permute.xlu0 %1178  ;;  %v1159_v60 = vpop.permute.xlu1 %1158 }
 0x38a   : > { %v1181_v46 = vsel %vm667_vm10, %v1175_v16, %v1179_v17  ;;  %v1183_v5 = vsel %vm667_vm10, %v1179_v17, %v1175_v16  ;;  %v1162_v47 = vsel %vm648_vm8, %v1155_v19, %v1159_v60  ;;  %v1164_v48 = vsel %vm648_vm8, %v1159_v60, %v1155_v19 }
 0x38b   : > { %v1186_v14 = vmul.f32 %v1181_v46, %v2774_v42  ;;  %v1187_v20 = vmul.f32 %v1183_v5, %v2777_v43  ;;  %v1166_v16 = vmul.f32 %v1162_v47, %v2752_v62  ;;  %v1167_v61 = vmul.f32 %v1164_v48, %v2755_v63 }
 0x38d   : > { %v1188_v26 = vpack.c.bf16 %v1186_v14, %v1184_v35  ;;  %v1161_v51 = vpop.permute.xlu0 %1160  ;;  %v1141_v55 = vpop.permute.xlu1 %1140  ;;  %v1189_v37 = vpack.c.bf16 %v1187_v20, %v1185_v11 }
 0x38e   : > { %v1163_v15 = vsel %vm648_vm8, %v1157_v2, %v1161_v51  ;;  %v1165_v22 = vsel %vm648_vm8, %v1161_v51, %v1157_v2  ;;  %v1144_v19 = vsel %vm629_vm5, %v1137_v38, %v1141_v55  ;;  %v1146_v17 = vsel %vm629_vm5, %v1141_v55, %v1137_v38 }
 0x38f   : > { %v1168_v12 = vmul.f32 %v1163_v15, %v2752_v62  ;;  %v1169_v6 = vmul.f32 %v1165_v22, %v2755_v63  ;;  %1245 = vmatprep.subr.bf16.mxu0 %v1189_v37  ;;  %v1148_v14 = vmul.f32 %v1144_v19, %v2734_v50  ;;  %v1149_v20 = vmul.f32 %v1146_v17, %v2739_v52 }
 0x390   : > { %1246 = vmatpush1.bf16.msra.mxu0 %v1188_v26 }
 0x391   : > { %v1170_v60 = vpack.c.bf16 %v1168_v12, %v1166_v16  ;;  %v1143_v46 = vpop.permute.xlu0 %1142  ;;  %v3172_v5 = vpop.permute.xlu1 %1190  ;;  %v1171_v2 = vpack.c.bf16 %v1169_v6, %v1167_v61 }
 0x392   : > { %v1145_v35 = vsel %vm629_vm5, %v1139_v49, %v1143_v46  ;;  %v1147_v11 = vsel %vm629_vm5, %v1143_v46, %v1139_v49 }
 0x393   : > { %v1150_v47 = vmul.f32 %v1145_v35, %v2734_v50  ;;  %v1151_v38 = vmul.f32 %v1147_v11, %v2739_v52  ;;  %1247 = vmatprep.subr.bf16.mxu0 %v1171_v2 }
 0x394   : > { %1248 = vmatpush1.bf16.msra.mxu0 %v1170_v60 }
 0x395   : > { %v1152_v48 = vpack.c.bf16 %v1150_v47, %v1148_v14  ;;  %v3182_v26 = vpop.permute.xlu0 %1192  ;;  %v1121_v51 = vpop.permute.xlu1 %1120  ;;  %v1153_v55 = vpack.c.bf16 %v1151_v38, %v1149_v20 }
 0x396   : > { %v1124_v37 = vsel %vm3992_vm4, %v1117_v56, %v1121_v51  ;;  %v1126_v49 = vsel %vm3992_vm4, %v1121_v51, %v1117_v56 }
 0x397   : > { %1249 = vmatprep.subr.bf16.mxu0 %v1153_v55  ;;  %v1128_v12 = vmul.f32 %v1126_v49, %v2714_v39  ;;  %v1129_v6 = vmul.f32 %v1124_v37, %v2717_v40 }
 0x398   : > { %1250 = vmatpush1.bf16.msra.mxu0 %v1152_v48 }
 0x399   : > { %v1123_v15 = vpop.permute.xlu0 %1122  ;;  %1251 = vmatprep.subr.bf16.mxu0 %v1135_v25  ;;  %v1103_v22 = vpop.permute.xlu1 %1102 }
 0x39a   : > { %v1125_v16 = vsel %vm3992_vm4, %v1119_v53, %v1123_v15  ;;  %v1127_v61 = vsel %vm3992_vm4, %v1123_v15, %v1119_v53  ;;  %v1106_v36 = vsel %vm589_vm1, %v3132_v34, %v1103_v22  ;;  %v1108_v13 = vsel %vm589_vm1, %v1103_v22, %v3132_v34 }
 0x39b   : > { %v1130_v19 = vmul.f32 %v1127_v61, %v2714_v39  ;;  %v1131_v56 = vmul.f32 %v1125_v16, %v2717_v40  ;;  %v1110_v35 = vmul.f32 %v1108_v13, %v2682_v27  ;;  %v1111_v34 = vmul.f32 %v1106_v36, %v2685_v28 }
 0x39c   : > { %1252 = vmatpush1.bf16.msra.mxu0 %v1134_v24 }
 0x39d   : > { %v1132_v25 = vpack.c.bf16 %v1130_v19, %v1128_v12  ;;  %v1105_v53 = vpop.permute.xlu0 %1104  ;;  %v1085_v17 = vpop.permute.xlu1 %1084  ;;  %v1133_v60 = vpack.c.bf16 %v1131_v56, %v1129_v6 }
 0x39e   : > { %v1107_v46 = vsel %vm589_vm1, %v3134_v57, %v1105_v53  ;;  %v1109_v2 = vsel %vm589_vm1, %v1105_v53, %v3134_v57  ;;  %v1088_v21 = vsel %vm3991_vm2, %v3136_v58, %v1085_v17  ;;  %v1090_v24 = vsel %vm3991_vm2, %v1085_v17, %v3136_v58 }
 0x39f   : > { %v1112_v11 = vmul.f32 %v1109_v2, %v2682_v27  ;;  %v1113_v0 = vmul.f32 %v1107_v46, %v2685_v28  ;;  %1253 = vmatprep.subr.bf16.mxu0 %v1133_v60  ;;  %v1092_v51 = vmul.f32 %v1090_v24, %v2689_v29  ;;  %v1093_v55 = vmul.f32 %v1088_v21, %v2693_v30  ;;  %v2462_v24 = vld [vmem:[%s2596_s27] sm:$0x3] }
 0x3a0   : > { %1254 = vmatpush1.bf16.msra.mxu0 %v1132_v25  ;;  %v1233_v21 = vrot.slane %v3113_v23, %v3122_v33 }
 0x3a1   : > { %v1114_v14 = vpack.c.bf16 %v1112_v11, %v1110_v35  ;;  %v1087_v57 = vpop.permute.xlu0 %1086  ;;  %v1067_v20 = vpop.permute.xlu1 %1066  ;;  %v1115_v47 = vpack.c.bf16 %v1113_v0, %v1111_v34 }
 0x3a2   : > { %v1089_v38 = vsel %vm3991_vm2, %v3138_v41, %v1087_v57  ;;  %v1091_v48 = vsel %vm3991_vm2, %v1087_v57, %v3138_v41  ;;  %v1070_v49 = vsel %vm551_vm3, %v3140_v54, %v1067_v20  ;;  %v1072_v15 = vsel %vm551_vm3, %v1067_v20, %v3140_v54 }
 0x3a3   : > { %v1094_v37 = vmul.f32 %v1091_v48, %v2689_v29  ;;  %v1095_v58 = vmul.f32 %v1089_v38, %v2693_v30  ;;  %1255 = vmatprep.subr.bf16.mxu0 %v1115_v47  ;;  %v1074_v19 = vmul.f32 %v1072_v15, %v2697_v31  ;;  %v1075_v56 = vmul.f32 %v1070_v49, %v2701_v32  ;;  %v2463_v49 = vld [vmem:[%s2591_s24] sm:$0x3] }
 0x3a4   : > { %1256 = vmatpush1.bf16.msra.mxu0 %v1114_v14  ;;  %v1287_v14 = vsub.f32 1.0, %v2462_v24  ;;  %v1286_v15 = vmul.f32 %v2463_v49, %v2462_v24 }
 0x3a5   : > { %v1096_v22 = vpack.c.bf16 %v1094_v37, %v1092_v51  ;;  %v1069_v41 = vpop.permute.xlu0 %1068  ;;  %v1195_v16 = vpop.permute.xlu1 %1194  ;;  %v1097_v61 = vpack.c.bf16 %v1095_v58, %v1093_v55 }
 0x3a6   : > { %v1071_v12 = vsel %vm551_vm3, %v3142_v59, %v1069_v41  ;;  %v1073_v6 = vsel %vm551_vm3, %v1069_v41, %v3142_v59  ;;  %v1198_v13 = vsel %vm3993_vm9, %v3172_v5, %v1195_v16  ;;  %v1200_v25 = vsel %vm3993_vm9, %v1195_v16, %v3172_v5 }
 0x3a7   : > { %v1076_v36 = vmul.f32 %v1073_v6, %v2697_v31  ;;  %v1077_v54 = vmul.f32 %v1071_v12, %v2701_v32  ;;  %1257 = vmatprep.subr.bf16.mxu0 %v1097_v61  ;;  %v1202_v2 = vmul.f32 %v2787_v45, %v1198_v13  ;;  %v1203_v35 = vmul.f32 %v2782_v44, %v1200_v25 }
 0x3a8   : > { %1258 = vmatpush1.bf16.msra.mxu0 %v1096_v22  ;;  %v1296_v47 = vrot.slane %v1287_v14, %v2586_v4 }
 0x3a9   : > { %v1078_v53 = vpack.c.bf16 %v1076_v36, %v1074_v19  ;;  %v1197_v59 = vpop.permute.xlu0 %1196  ;;  %v1079_v17 = vpack.c.bf16 %v1077_v54, %v1075_v56 }
 0x3aa   : > { %v1199_v60 = vsel %vm3993_vm9, %v3182_v26, %v1197_v59  ;;  %v1201_v46 = vsel %vm3993_vm9, %v1197_v59, %v3182_v26 }
 0x3ab   : > { %v1204_v34 = vmul.f32 %v2787_v45, %v1199_v60  ;;  %v1205_v5 = vmul.f32 %v2782_v44, %v1201_v46  ;;  %1259 = vmatprep.subr.bf16.mxu0 %v1079_v17  ;;  %v1292_v44 = vrot.slane %v1287_v14, %v2583_v3 }
 0x3ac   : > { %1260 = vmatpush1.bf16.msra.mxu0 %v1078_v53 }
 0x3ad   : > { %v1206_v11 = vpack.c.bf16 %v1204_v34, %v1202_v2  ;;  %v1207_v0 = vpack.c.bf16 %v1205_v5, %v1203_v35 }
 0x3af   : > { %1275 = vmatprep.subr.bf16.mxu0 %v1207_v0 }
 0x3b0   : > { %1276 = vmatpush2.bf16.msra.mxu0 %v1206_v11 }
 0x3b2   : > { %v1212_v26 = vpop.permute.xlu1 %1211 }
 0x3b3   : > { %1278 = vmatmul.mubr.bf16.vlgmr.msra.gmra.mxu0 %v1233_v21  ;;  %v1217_v57 = vrot.slane %v1212_v26, %v2583_v3 }
 0x473   : > { %v1279_v20 = vpop.f32.mrf.mxu0 }
 0x474   : > { %v1280_v45 = vadd.f32 %v1279_v20, %v1217_v57 }
 0x475   : > { %v1281_v38 = vpop.f32.mrf.mxu0 }
 0x476   : > { %v1282_v48 = vadd.f32 %v1281_v38, %v1217_v57  ;;  %v1299_v55 = vmul.f32 %v1292_v44, %v1280_v45  ;;  %v2484_v57 = vmov 65535  }
 0x477   : > { %v1283_v51 = vpop.f32.mrf.mxu0  ;;  %v1576_v20 = vsel %vm750_vm12, 4294967295, %v2484_v57 }
 0x478   : > { %v1300_v37 = vmul.f32 %v1296_v47, %v1282_v48 }
 0x479   : > { %v1284_v23 = vpop.f32.mrf.mxu0 }
 0x47a   : > { %v1303_v58 = vcombine.low %v1299_v55, %v1300_v37  ;;  %v3347_v23 = vsel %vm755_vm13, %v1576_v20, 0 }
 0x47c   : > { %v1310_v22 = vrot.slane %v1303_v58, %v3122_v33 }
 0x47e   : > { %v1317_v41 = vrot.slane %v1310_v22, %v3122_v33 }
 0x480   : > { %v1319_v16 = vadd.f32 %v1317_v41, %v1286_v15 }
 0x482   : > { %v1324_v61 = vrot.slane %v1319_v16, %v2583_v3  ;;  %v1328_v12 = vrot.slane %v1319_v16, %v2586_v4  ;;  %v1556_v3 = vld [vmem:[%s3979_s10 + $0x8] sm:$0xff]  ;;  %v1555_v4 = vld [vmem:[%s3979_s10] sm:$0xff] }
 0x484   : > { %v1331_v6 = vsel %vm3994_vm0, %v2601_v7, %v1324_v61  ;;  %v1332_v19 = vsel %vm3994_vm0, %v2607_v9, %v1328_v12 }
 0x485   : > { %v3283_v56 = vsel %vm735_vm6, %v1331_v6, %v2604_v8  ;;  %v3287_v36 = vsel %vm735_vm6, %v1332_v19, %v2610_v10 }
 0x486   : > { %1381 = vrot.lane.b32.xlu1 %v3287_v36, %s2478_s17  ;;  %1379 = vrot.lane.b32.xlu0 %v3283_v56, %s2478_s17  ;;  %v1378_v58 = vpack.c.bf16 %v3287_v36, %v3287_v36  ;;  %v1377_v49 = vpack.c.bf16 %v3283_v56, %v3283_v56 }
 0x48a   : > { %1401 = vrot.lane.b32.xlu1 %v3287_v36, %s2482_s8  ;;  %1399 = vrot.lane.b32.xlu0 %v3283_v56, %s2482_s8 }
 0x48e   : > { %1349 = vrot.lane.b32.xlu1 %v3287_v36, %s3997_s22  ;;  %1347 = vrot.lane.b32.xlu0 %v3283_v56, %s3997_s22 }
 0x492   : > { %1391 = vrot.lane.b32.xlu1 %v3287_v36, %s2479_s18  ;;  %1389 = vrot.lane.b32.xlu0 %v3283_v56, %s2479_s18 }
 0x496   : > { %1369 = vrot.lane.b32.xlu1 %v3287_v36, %s2477_s16  ;;  %1367 = vrot.lane.b32.xlu0 %v3283_v56, %s2477_s16 }
 0x49a   : > { %1411 = vrot.lane.b32.xlu1 %v3287_v36, %s3996_s19  ;;  %1409 = vrot.lane.b32.xlu0 %v3283_v56, %s3996_s19 }
 0x49e   : > { %1359 = vrot.lane.b32.xlu1 %v3287_v36, %s2474_s28  ;;  %1357 = vrot.lane.b32.xlu0 %v3283_v56, %s2474_s28 }
 0x4a2   : > { %1339 = vrot.lane.b32.xlu1 %v3287_v36, %s3995_s30  ;;  %1337 = vrot.lane.b32.xlu0 %v3283_v56, %s3995_s30 }
 0x4a6   : > { %1564 = vperm.xlu1 %2447, %v1556_v3   ;;  %1559 = vperm.xlu0 %2446, %v1555_v4  }
 0x4f8   : > { %v1382_v7 = vpop.permute.xlu1 %1381  ;;  %v1380_v8 = vpop.permute.xlu0 %1379 }
 0x4f9   : > { %v1383_v9 = vsel %vm629_vm5, %v1380_v8, %v1382_v7  ;;  %v1384_v10 = vsel %vm629_vm5, %v1382_v7, %v1380_v8 }
 0x4fa   : > { %v1385_v54 = vmul.f32 %v1383_v9, %v2734_v50  ;;  %v1386_v13 = vmul.f32 %v1384_v10, %v2739_v52 }
 0x4fc   : > { %v1402_v25 = vpop.permute.xlu1 %1401  ;;  %v1400_v53 = vpop.permute.xlu0 %1399  ;;  %v1387_v60 = vpack.c.bf16 %v1385_v54, %v1385_v54  ;;  %v1388_v46 = vpack.c.bf16 %v1386_v13, %v1386_v13 }
 0x4fd   : > { %v1403_v59 = vsel %vm667_vm10, %v1400_v53, %v1402_v25  ;;  %v1404_v17 = vsel %vm667_vm10, %v1402_v25, %v1400_v53 }
 0x4fe   : > { %v1405_v2 = vmul.f32 %v1403_v59, %v2774_v42  ;;  %v1406_v35 = vmul.f32 %v1404_v17, %v2777_v43  ;;  %v1464_v24 = vshll.u32 %v1387_v60, 16  ;;  %v1468_v45 = vshll.u32 %v1388_v46, 16 }
 0x4ff   : > { %v1471_v22 = vshrl.u32 %v1387_v60, 16  ;;  %v1474_v41 = vshrl.u32 %v1388_v46, 16 }
 0x500   : > { %v1350_v34 = vpop.permute.xlu1 %1349  ;;  %v1348_v5 = vpop.permute.xlu0 %1347  ;;  %v1407_v11 = vpack.c.bf16 %v1405_v2, %v1405_v2  ;;  %v1408_v0 = vpack.c.bf16 %v1406_v35, %v1406_v35  ;;  %v3353_v15 = vrot.slane %v1464_v24, 1  ;;  %v3355_v61 = vrot.slane %v1468_v45, 1 }
 0x501   : > { %v1351_v21 = vsel %vm3991_vm2, %v1348_v5, %v1350_v34  ;;  %v1352_v26 = vsel %vm3991_vm2, %v1350_v34, %v1348_v5  ;;  %vm1506_vm2 = vsmask.f32 1280 }
 0x502   : > { %v1353_v14 = vmul.f32 %v1352_v26, %v2689_v29  ;;  %v1354_v44 = vmul.f32 %v1351_v21, %v2693_v30  ;;  %v1484_v47 = vshrl.u32 %v1407_v11, 16  ;;  %v1487_v38 = vshll.u32 %v1407_v11, 16 }
 0x503   : > { %v1492_v48 = vshrl.u32 %v1408_v0, 16  ;;  %v1495_v51 = vshll.u32 %v1408_v0, 16  ;;  %v1473_v2 = vor.u32 %v1471_v22, %v3353_v15  ;;  %v1476_v35 = vor.u32 %v1474_v41, %v3355_v61  ;;  %v3390_v22 = vld [vmem:[%s3971_s2 + $0x10] ss:$0 sm:$0xff] }
 0x504   : > { %v1392_v55 = vpop.permute.xlu1 %1391  ;;  %v1390_v37 = vpop.permute.xlu0 %1389  ;;  %v1355_v16 = vpack.c.bf16 %v1353_v14, %v1353_v14  ;;  %v1356_v12 = vpack.c.bf16 %v1354_v44, %v1354_v44  ;;  %v3361_v3 = vrot.slane %v1484_v47, 5  ;;  %v3363_v4 = vrot.slane %v1487_v38, 6 }
 0x505   : > { %v1393_v6 = vsel %vm648_vm8, %v1390_v37, %v1392_v55  ;;  %v1394_v19 = vsel %vm648_vm8, %v1392_v55, %v1390_v37  ;;  %v3365_v7 = vrot.slane %v1492_v48, 5  ;;  %v3367_v8 = vrot.slane %v1495_v51, 6 }
 0x506   : > { %v1395_v54 = vmul.f32 %v1393_v6, %v2752_v62  ;;  %v1396_v13 = vmul.f32 %v1394_v19, %v2755_v63  ;;  %v1420_v59 = vshrl.u32 %v1355_v16, 16  ;;  %v1423_v17 = vshll.u32 %v1355_v16, 16  ;;  %v3396_v16 = vld [vmem:[%s3971_s2 + $0x18] ss:$0 sm:$0xff] }
 0x507   : > { %v1490_v11 = vor.u32 %v3363_v4, %v3361_v3  ;;  %v1428_v0 = vshrl.u32 %v1356_v12, 16  ;;  %v1431_v21 = vshll.u32 %v1356_v12, 16  ;;  %v1498_v47 = vor.u32 %v3367_v8, %v3365_v7 }
 0x508   : > { %v1370_v9 = vpop.permute.xlu1 %1369  ;;  %v1368_v10 = vpop.permute.xlu0 %1367  ;;  %v1397_v34 = vpack.c.bf16 %v1395_v54, %v1395_v54  ;;  %v1398_v5 = vpack.c.bf16 %v1396_v13, %v1396_v13  ;;  %v1422_v38 = vrot.slane %v1420_v59, 6  ;;  %v1425_v48 = vrot.slane %v1423_v17, 7 }
 0x509   : > { %v1371_v25 = vsel %vm3992_vm4, %v1368_v10, %v1370_v9  ;;  %v1372_v53 = vsel %vm3992_vm4, %v1370_v9, %v1368_v10  ;;  %vm1519_vm4 = vsmask.f32 4352  ;;  %v1430_v6 = vrot.slane %v1428_v0, 6 }
 0x50a   : > { %v1373_v60 = vmul.f32 %v1372_v53, %v2714_v39  ;;  %v1374_v46 = vmul.f32 %v1371_v25, %v2717_v40  ;;  %v1481_v57 = vrot.slane %v1397_v34, 7  ;;  %v1482_v20 = vrot.slane %v1398_v5, 7 }
 0x50b   : > { %v1433_v19 = vrot.slane %v1431_v21, 7 }
 0x50c   : > { %v1375_v26 = vpack.c.bf16 %v1373_v60, %v1373_v60  ;;  %v1412_v24 = vpop.permute.xlu1 %1411  ;;  %v1410_v14 = vpop.permute.xlu0 %1409  ;;  %v1376_v51 = vpack.c.bf16 %v1374_v46, %v1374_v46  ;;  %v1538_v3 = vsel %vm3994_vm0, %v1473_v2, %v1481_v57  ;;  %v1542_v4 = vsel %vm3994_vm0, %v1476_v35, %v1482_v20 }
 0x50d   : > { %v1413_v45 = vsel %vm3993_vm9, %v1410_v14, %v1412_v24  ;;  %v1414_v44 = vsel %vm3993_vm9, %v1412_v24, %v1410_v14  ;;  %vm1546_vm9 = vmand %vm740_vm7, %vm1545_vm15  ;;  %vm1532_vm0 = vsmask.f32 7424 }
 0x50e   : > { %v1442_v55 = vshrl.u32 %v1375_v26, 16  ;;  %v1445_v37 = vshll.u32 %v1375_v26, 16  ;;  %v1415_v41 = vmul.f32 %v3390_v22, %v1413_v45  ;;  %v1416_v12 = vmul.f32 %v3396_v16, %v1414_v44  ;;  %vm3419_vm15 = vmand %vm735_vm6, %vm1506_vm2 }
 0x50f   : > { %v1450_v25 = vshrl.u32 %v1376_v51, 16  ;;  %v1453_v53 = vshll.u32 %v1376_v51, 16  ;;  %v1547_v26 = vsel %vm1546_vm9, %v1538_v3, %v1490_v11  ;;  %v1548_v24 = vsel %vm1546_vm9, %v1542_v4, %v1498_v47 }
 0x510   : > { %v1360_v7 = vpop.permute.xlu1 %1359  ;;  %v1358_v8 = vpop.permute.xlu0 %1357  ;;  %v1417_v9 = vpack.c.bf16 %v1415_v41, %v1415_v41  ;;  %v1418_v10 = vpack.c.bf16 %v1416_v12, %v1416_v12  ;;  %v1444_v60 = vrot.slane %v1442_v55, 3  ;;  %v1447_v46 = vrot.slane %v1445_v37, 4 }
 0x511   : > { %v1361_v54 = vsel %vm589_vm1, %v1358_v8, %v1360_v7  ;;  %v1362_v13 = vsel %vm589_vm1, %v1360_v7, %v1358_v8  ;;  %v1452_v44 = vrot.slane %v1450_v25, 3  ;;  %v1455_v51 = vrot.slane %v1453_v53, 4 }
 0x512   : > { %v1363_v59 = vmul.f32 %v1362_v13, %v2682_v27  ;;  %v1364_v17 = vmul.f32 %v1361_v54, %v2685_v28  ;;  %v1503_v2 = vrot.slane %v1417_v9, 4  ;;  %v1504_v35 = vrot.slane %v1418_v10, 4 }
 0x513   : > { %vm1531_vm9 = vcmask 1047552   ;;  %v1426_v12 = vor.u32 %v1425_v48, %v1422_v38  ;;  %v1434_v3 = vor.u32 %v1433_v19, %v1430_v6  ;;  %v1448_v10 = vor.u32 %v1447_v46, %v1444_v60 }
 0x514   : > { %v1365_v34 = vpack.c.bf16 %v1363_v59, %v1363_v59  ;;  %v1366_v5 = vpack.c.bf16 %v1364_v17, %v1364_v17  ;;  %v1340_v0 = vpop.permute.xlu1 %1339  ;;  %v1338_v21 = vpop.permute.xlu0 %1337  ;;  %v1551_v20 = vsel %vm745_vm11, %v1547_v26, %v1503_v2  ;;  %v1554_v45 = vsel %vm745_vm11, %v1548_v24, %v1504_v35  ;;  %vm1520_vm11 = vmand %vm750_vm12, %vm1519_vm4 }
 0x515   : > { %v1341_v14 = vsel %vm551_vm3, %v1338_v21, %v1340_v0  ;;  %v1342_v57 = vsel %vm551_vm3, %v1340_v0, %v1338_v21  ;;  %v1578_v47 = vand.u32 %v3347_v23, %v1551_v20  ;;  %v1580_v41 = vand.u32 %v3347_v23, %v1554_v45  ;;  %vm1533_vm2 = vmand %vm1531_vm9, %vm1532_vm0  ;;  %v2453_v45 = vld [vmem:[%s3980_s11 + $0x4] ss:$8 sps:$4 sm:$0xff]  }
 0x516   : > { %v1343_v55 = vmul.f32 %v1342_v57, %v2697_v31  ;;  %v1344_v37 = vmul.f32 %v1341_v14, %v2701_v32  ;;  %v1439_v8 = vrot.slane %v1365_v34, 5  ;;  %v1440_v9 = vrot.slane %v1366_v5, 5  ;;  %2418 = vmatprep.mubr.msk.bf16.mxu0 %vm1010_vm14, %v2453_v45 }
 0x517   : > { %1594 = vmatprep.subr.bf16.mxu1 %v1580_v41  ;;  %v1456_v54 = vor.u32 %v1455_v51, %v1452_v44  ;;  %v1462_v48 = vrot.slane %v1378_v58, 2  ;;  %v1461_v19 = vrot.slane %v1377_v49, 2  ;;  %v2452_v58 = vld [vmem:[%s3978_s9] sm:$0xff]   ;;  %vm1572_vm0 = vcmask 220160   ;;  %v1778_v51 = vld [vmem:[%s3981_s12 + $0x8] sm:$0xff] }
 0x518   : > { %v1345_v4 = vpack.c.bf16 %v1343_v55, %v1343_v55  ;;  %v1346_v7 = vpack.c.bf16 %v1344_v37, %v1344_v37  ;;  %1595 = vmatpush1.bf16.msra.mxu1 %v1578_v47  ;;  %v1777_v44 = vld [vmem:[%s3981_s12] sm:$0xff]  ;;  %vm4000_vm4 = vcmp.lt.s32.totalorder %v2664_v18, 1 }
 0x519   : > { %vm4001_vm6 = vmmov %vm4000_vm4 }
 0x51a   : > { %v1508_v13 = vsel %vm3419_vm15, %v1345_v4, %v1426_v12  ;;  %v1509_v23 = vsel %vm3419_vm15, %v1346_v7, %v1434_v3  ;;  %vm4003_vm12 = vmmov %vm4000_vm4 }
 0x51b   : > { %v1512_v38 = vsel %vm740_vm7, %v1508_v13, %v1439_v8  ;;  %v1516_v6 = vsel %vm740_vm7, %v1509_v23, %v1440_v9  ;;  %vm4002_vm7 = vmmov %vm4000_vm4 }
 0x51c   : > { %v1522_v25 = vsel %vm1520_vm11, %v1516_v6, %v1456_v54  ;;  %v1521_v53 = vsel %vm1520_vm11, %v1512_v38, %v1448_v10 }
 0x51d   : > { %v1529_v59 = vsel %vm755_vm13, %v1522_v25, %v1462_v48  ;;  %v1525_v17 = vsel %vm755_vm13, %v1521_v53, %v1461_v19  ;;  %vm4004_vm13 = vcmp.lt.s32.totalorder %v2664_v18, 16 }
 0x51e   : > { %v1535_v60 = vsel %vm1533_vm2, %v1529_v59, %v3355_v61  ;;  %v1534_v36 = vsel %vm1533_vm2, %v1525_v17, %v3353_v15  ;;  %vm4005_vm15 = vmmov %vm4004_vm13  ;;  %vm4008_vm2 = vcmp.lt.s32.totalorder %v2664_v18, 111 }
 0x51f   : > { %1596 = vmatprep.subr.bf16.mxu1 %v1535_v60  ;;  %vm4006_vm9 = vmmov %vm4004_vm13 }
 0x520   : > { %1597 = vmatpush1.bf16.msra.mxu1 %v1534_v36  ;;  %vm4007_vm11 = vmmov %vm4006_vm9 }
 0x521   : > { %v1560_v56 = vpop.permute.xlu0 %1559  ;;  %v1565_v34 = vpop.permute.xlu1 %1564 }
 0x523   : > { %2415 = vmatmul.mubr.msk.bf16.vlgmr.msra.gmra.mxu1 %vm1572_vm0, %v2452_v58  ;;  %vm4009_vm0 = vmmov %vm4008_vm2 }
 0x5e3   : > { %v1616_v49 = vpop.f32.mrf.mxu1 }
 0x5e4   : > { %v1617_v46 = vadd.f32 %v1616_v49, %v1560_v56 }
 0x5e5   : > { %v1618_v2 = vpop.f32.mrf.mxu1 }
 0x5e6   : > { %v3448_v35 = vmax.f32 %v1617_v46, 0.0  ;;  %v1619_v0 = vadd.f32 %v1618_v2, %v1560_v56 }
 0x5e7   : > { %v1620_v5 = vpop.f32.mrf.mxu1 }
 0x5e8   : > { %v1621_v61 = vadd.f32 %v1620_v5, %v1565_v34  ;;  %1741 = vrot.lane.b32.xlu0 %v3448_v35, %s2482_s8  ;;  %v3454_v24 = vmax.f32 %v1619_v0, 0.0 }
 0x5e9   : > { %v1622_v15 = vpop.f32.mrf.mxu1 }
 0x5ea   : > { %v3452_v21 = vmax.f32 %v1621_v61, 0.0  ;;  %v1623_v26 = vadd.f32 %v1622_v15, %v1565_v34 }
 0x5ec   : > { %v3456_v14 = vmax.f32 %v1623_v26, 0.0  ;;  %1743 = vrot.lane.b32.xlu1 %v3452_v21, %s2482_s8  ;;  %1723 = vrot.lane.b32.xlu0 %v3448_v35, %s2479_s18  ;;  %v1703_v57 = vpack.c.bf16 %v3452_v21, %v3448_v35 }
 0x5ee   : > { %v1704_v20 = vpack.c.bf16 %v3456_v14, %v3454_v24 }
 0x5f0   : > { %1725 = vrot.lane.b32.xlu1 %v3452_v21, %s2479_s18  ;;  %1705 = vrot.lane.b32.xlu0 %v3448_v35, %s2478_s17 }
 0x5f4   : > { %1707 = vrot.lane.b32.xlu1 %v3452_v21, %s2478_s17  ;;  %1685 = vrot.lane.b32.xlu0 %v3448_v35, %s2477_s16 }
 0x5f8   : > { %1687 = vrot.lane.b32.xlu1 %v3452_v21, %s2477_s16  ;;  %1667 = vrot.lane.b32.xlu0 %v3448_v35, %s2474_s28 }
 0x5fc   : > { %1669 = vrot.lane.b32.xlu1 %v3452_v21, %s2474_s28  ;;  %1649 = vrot.lane.b32.xlu0 %v3448_v35, %s3997_s22 }
 0x600   : > { %1651 = vrot.lane.b32.xlu1 %v3452_v21, %s3997_s22  ;;  %1631 = vrot.lane.b32.xlu0 %v3448_v35, %s3995_s30 }
 0x604   : > { %1633 = vrot.lane.b32.xlu1 %v3452_v21, %s3995_s30  ;;  %1745 = vrot.lane.b32.xlu0 %v3454_v24, %s2482_s8 }
 0x608   : > { %1747 = vrot.lane.b32.xlu1 %v3456_v14, %s2482_s8  ;;  %1727 = vrot.lane.b32.xlu0 %v3454_v24, %s2479_s18 }
 0x60c   : > { %1729 = vrot.lane.b32.xlu1 %v3456_v14, %s2479_s18  ;;  %1709 = vrot.lane.b32.xlu0 %v3454_v24, %s2478_s17 }
 0x610   : > { %1711 = vrot.lane.b32.xlu1 %v3456_v14, %s2478_s17  ;;  %1759 = vrot.lane.b32.xlu0 %v3448_v35, %s3996_s19 }
 0x614   : > { %1761 = vrot.lane.b32.xlu1 %v3452_v21, %s3996_s19  ;;  %1689 = vrot.lane.b32.xlu0 %v3454_v24, %s2477_s16 }
 0x618   : > { %1691 = vrot.lane.b32.xlu1 %v3456_v14, %s2477_s16  ;;  %1671 = vrot.lane.b32.xlu0 %v3454_v24, %s2474_s28 }
 0x61c   : > { %1673 = vrot.lane.b32.xlu1 %v3456_v14, %s2474_s28  ;;  %1653 = vrot.lane.b32.xlu0 %v3454_v24, %s3997_s22 }
 0x620   : > { %1655 = vrot.lane.b32.xlu1 %v3456_v14, %s3997_s22  ;;  %1635 = vrot.lane.b32.xlu0 %v3454_v24, %s3995_s30 }
 0x624   : > { %1637 = vrot.lane.b32.xlu1 %v3456_v14, %s3995_s30  ;;  %1763 = vrot.lane.b32.xlu0 %v3454_v24, %s3996_s19 }
 0x628   : > { %1765 = vrot.lane.b32.xlu1 %v3456_v14, %s3996_s19  ;;  %1781 = vperm.xlu0 %2446, %v1777_v44  }
 0x62c   : > { %1786 = vperm.xlu1 %2447, %v1778_v51  }
 0x65a   : > { %v1742_v55 = vpop.permute.xlu0 %1741 }
 0x65e   : > { %v1744_v37 = vpop.permute.xlu1 %1743  ;;  %v1724_v11 = vpop.permute.xlu0 %1723 }
 0x662   : > { %v1726_v47 = vpop.permute.xlu1 %1725  ;;  %v1706_v41 = vpop.permute.xlu0 %1705 }
 0x666   : > { %v1708_v12 = vpop.permute.xlu1 %1707  ;;  %v1686_v3 = vpop.permute.xlu0 %1685 }
 0x66a   : > { %v1688_v4 = vpop.permute.xlu1 %1687  ;;  %v3534_v7 = vpop.permute.xlu0 %1667 }
 0x66e   : > { %v3536_v8 = vpop.permute.xlu1 %1669  ;;  %v3538_v9 = vpop.permute.xlu0 %1649 }
 0x672   : > { %v3540_v10 = vpop.permute.xlu1 %1651  ;;  %v3542_v54 = vpop.permute.xlu0 %1631 }
 0x676   : > { %v3544_v13 = vpop.permute.xlu1 %1633  ;;  %v1746_v23 = vpop.permute.xlu0 %1745 }
 0x677   : > { %v1749_v38 = vsel %vm667_vm10, %v1742_v55, %v1746_v23  ;;  %v1751_v48 = vsel %vm667_vm10, %v1746_v23, %v1742_v55 }
 0x678   : > { %v1753_v59 = vmul.f32 %v1749_v38, %v2774_v42  ;;  %v1754_v17 = vmul.f32 %v1751_v48, %v2777_v43 }
 0x67a   : > { %v1748_v6 = vpop.permute.xlu1 %1747  ;;  %v1728_v19 = vpop.permute.xlu0 %1727 }
 0x67b   : > { %v1750_v25 = vsel %vm667_vm10, %v1744_v37, %v1748_v6  ;;  %v1752_v53 = vsel %vm667_vm10, %v1748_v6, %v1744_v37  ;;  %v1731_v58 = vsel %vm648_vm8, %v1724_v11, %v1728_v19  ;;  %v1733_v56 = vsel %vm648_vm8, %v1728_v19, %v1724_v11 }
 0x67c   : > { %v1755_v60 = vmul.f32 %v1750_v25, %v2774_v42  ;;  %v1756_v36 = vmul.f32 %v1752_v53, %v2777_v43  ;;  %v1735_v61 = vmul.f32 %v1731_v58, %v2752_v62  ;;  %v1736_v15 = vmul.f32 %v1733_v56, %v2755_v63 }
 0x67e   : > { %v1757_v49 = vpack.c.bf16 %v1755_v60, %v1753_v59  ;;  %v1730_v46 = vpop.permute.xlu1 %1729  ;;  %v1710_v2 = vpop.permute.xlu0 %1709  ;;  %v1758_v34 = vpack.c.bf16 %v1756_v36, %v1754_v17 }
 0x67f   : > { %v1732_v5 = vsel %vm648_vm8, %v1726_v47, %v1730_v46  ;;  %v1734_v0 = vsel %vm648_vm8, %v1730_v46, %v1726_v47  ;;  %v1713_v44 = vsel %vm629_vm5, %v1706_v41, %v1710_v2  ;;  %v1715_v51 = vsel %vm629_vm5, %v1710_v2, %v1706_v41 }
 0x680   : > { %v1737_v26 = vmul.f32 %v1732_v5, %v2752_v62  ;;  %v1738_v45 = vmul.f32 %v1734_v0, %v2755_v63  ;;  %1801 = vmatprep.subr.bf16.mxu0 %v1758_v34  ;;  %v1717_v48 = vmul.f32 %v1713_v44, %v2734_v50  ;;  %v1718_v6 = vmul.f32 %v1715_v51, %v2739_v52 }
 0x681   : > { %1802 = vmatpush1.bf16.msra.mxu0 %v1757_v49 }
 0x682   : > { %v1739_v55 = vpack.c.bf16 %v1737_v26, %v1735_v61  ;;  %v1712_v37 = vpop.permute.xlu1 %1711  ;;  %v3574_v11 = vpop.permute.xlu0 %1759  ;;  %v1740_v47 = vpack.c.bf16 %v1738_v45, %v1736_v15 }
 0x683   : > { %v1714_v23 = vsel %vm629_vm5, %v1708_v12, %v1712_v37  ;;  %v1716_v38 = vsel %vm629_vm5, %v1712_v37, %v1708_v12 }
 0x684   : > { %v1719_v19 = vmul.f32 %v1714_v23, %v2734_v50  ;;  %v1720_v41 = vmul.f32 %v1716_v38, %v2739_v52  ;;  %1803 = vmatprep.subr.bf16.mxu0 %v1740_v47 }
 0x685   : > { %1804 = vmatpush1.bf16.msra.mxu0 %v1739_v55 }
 0x686   : > { %v1721_v25 = vpack.c.bf16 %v1719_v19, %v1717_v48  ;;  %v3584_v53 = vpop.permute.xlu1 %1761  ;;  %v1690_v59 = vpop.permute.xlu0 %1689  ;;  %v1722_v17 = vpack.c.bf16 %v1720_v41, %v1718_v6 }
 0x687   : > { %v1693_v60 = vsel %vm4000_vm4, %v1686_v3, %v1690_v59  ;;  %v1695_v12 = vsel %vm4001_vm6, %v1690_v59, %v1686_v3  ;;  %vm4010_vm4 = vmmov %vm4009_vm0 }
 0x688   : > { %1805 = vmatprep.subr.bf16.mxu0 %v1722_v17  ;;  %v1697_v46 = vmul.f32 %v1695_v12, %v2714_v39  ;;  %v1698_v2 = vmul.f32 %v1693_v60, %v2717_v40  ;;  %vm4011_vm6 = vmmov %vm4009_vm0 }
 0x689   : > { %1806 = vmatpush1.bf16.msra.mxu0 %v1721_v25 }
 0x68a   : > { %v1692_v36 = vpop.permute.xlu1 %1691  ;;  %1807 = vmatprep.subr.bf16.mxu0 %v1704_v20  ;;  %v1672_v58 = vpop.permute.xlu0 %1671 }
 0x68b   : > { %v1694_v56 = vsel %vm4002_vm7, %v1688_v4, %v1692_v36  ;;  %v1696_v49 = vsel %vm4003_vm12, %v1692_v36, %v1688_v4  ;;  %v1675_v24 = vsel %vm589_vm1, %v3534_v7, %v1672_v58  ;;  %v1677_v14 = vsel %vm589_vm1, %v1672_v58, %v3534_v7 }
 0x68c   : > { %v1699_v34 = vmul.f32 %v1696_v49, %v2714_v39  ;;  %v1700_v3 = vmul.f32 %v1694_v56, %v2717_v40  ;;  %v1679_v26 = vmul.f32 %v1677_v14, %v2682_v27  ;;  %v1680_v7 = vmul.f32 %v1675_v24, %v2685_v28 }
 0x68d   : > { %1808 = vmatpush1.bf16.msra.mxu0 %v1703_v57 }
 0x68e   : > { %v1701_v20 = vpack.c.bf16 %v1699_v34, %v1697_v46  ;;  %v1674_v4 = vpop.permute.xlu1 %1673  ;;  %v1654_v5 = vpop.permute.xlu0 %1653  ;;  %v1702_v0 = vpack.c.bf16 %v1700_v3, %v1698_v2 }
 0x68f   : > { %v1676_v61 = vsel %vm589_vm1, %v3536_v8, %v1674_v4  ;;  %v1678_v15 = vsel %vm589_vm1, %v1674_v4, %v3536_v8  ;;  %v1657_v21 = vsel %vm4004_vm13, %v3538_v9, %v1654_v5  ;;  %v1659_v57 = vsel %vm4005_vm15, %v1654_v5, %v3538_v9  ;;  %vm4020_vm15 = vmmov %vm4009_vm0 }
 0x690   : > { %v1681_v45 = vmul.f32 %v1678_v15, %v2682_v27  ;;  %v1682_v35 = vmul.f32 %v1676_v61, %v2685_v28  ;;  %1809 = vmatprep.subr.bf16.mxu0 %v1702_v0  ;;  %v1661_v23 = vmul.f32 %v1659_v57, %v2689_v29  ;;  %v1662_v38 = vmul.f32 %v1657_v21, %v2693_v30  ;;  %v2455_v0 = vld [vmem:[%s3980_s11] ss:$8 sps:$4 sm:$0xff]  }
 0x691   : > { %1810 = vmatpush1.bf16.msra.mxu0 %v1701_v20 }
 0x692   : > { %v1683_v44 = vpack.c.bf16 %v1681_v45, %v1679_v26  ;;  %v1656_v8 = vpop.permute.xlu1 %1655  ;;  %v1636_v51 = vpop.permute.xlu0 %1635  ;;  %v1684_v55 = vpack.c.bf16 %v1682_v35, %v1680_v7 }
 0x693   : > { %v1658_v37 = vsel %vm4006_vm9, %v3540_v10, %v1656_v8  ;;  %v1660_v47 = vsel %vm4007_vm11, %v1656_v8, %v3540_v10  ;;  %v1639_v6 = vsel %vm551_vm3, %v3542_v54, %v1636_v51  ;;  %v1641_v19 = vsel %vm551_vm3, %v1636_v51, %v3542_v54  ;;  %vm4023_vm11 = vmmov %vm4009_vm0 }
 0x694   : > { %v1663_v48 = vmul.f32 %v1660_v47, %v2689_v29  ;;  %v1664_v9 = vmul.f32 %v1658_v37, %v2693_v30  ;;  %1811 = vmatprep.subr.bf16.mxu0 %v1684_v55  ;;  %v1643_v12 = vmul.f32 %v1641_v19, %v2697_v31  ;;  %v1644_v36 = vmul.f32 %v1639_v6, %v2701_v32 }
 0x695   : > { %1812 = vmatpush1.bf16.msra.mxu0 %v1683_v44 }
 0x696   : > { %v1665_v41 = vpack.c.bf16 %v1663_v48, %v1661_v23  ;;  %v1638_v10 = vpop.permute.xlu1 %1637  ;;  %v1764_v25 = vpop.permute.xlu0 %1763  ;;  %v1666_v59 = vpack.c.bf16 %v1664_v9, %v1662_v38  ;;  %v3744_v38 = vld.sshfl [vmem:[%s3982_s13] sm:$0x33 pattern:$0x76325410] }
 0x697   : > { %v1640_v17 = vsel %vm551_vm3, %v3544_v13, %v1638_v10  ;;  %v1642_v60 = vsel %vm551_vm3, %v1638_v10, %v3544_v13  ;;  %v1767_v56 = vsel %vm4008_vm2, %v3574_v11, %v1764_v25  ;;  %v1769_v49 = vsel %vm4009_vm0, %v1764_v25, %v3574_v11  ;;  %v1995_v9 = vld [vmem:[%s3983_s14] sm:$0xf] }
 0x698   : > { %v1645_v58 = vmul.f32 %v1642_v60, %v2697_v31  ;;  %v1646_v54 = vmul.f32 %v1640_v17, %v2701_v32  ;;  %1813 = vmatprep.subr.bf16.mxu0 %v1666_v59  ;;  %v1771_v24 = vmul.f32 %v3390_v22, %v1767_v56  ;;  %v1772_v14 = vmul.f32 %v3396_v16, %v1769_v49 }
 0x699   : > { %1814 = vmatpush1.bf16.msra.mxu0 %v1665_v41  ;;  %v2009_v48 = vcombine.high %v3744_v38, %v3744_v38  ;;  %vm4024_vm2 = vcmask 1040384  }
 0x69a   : > { %v1647_v46 = vpack.c.bf16 %v1645_v58, %v1643_v12  ;;  %v1766_v13 = vpop.permute.xlu1 %1765  ;;  %v1648_v2 = vpack.c.bf16 %v1646_v54, %v1644_v36 }
 0x69b   : > { %v1768_v34 = vsel %vm4010_vm4, %v3584_v53, %v1766_v13  ;;  %v1770_v3 = vsel %vm4011_vm6, %v1766_v13, %v3584_v53  ;;  %2420 = vmatprep.mubr.msk.bf16.mxu1 %vm1010_vm14, %v2009_v48  ;;  %vm3913_vm4 = vcmp.lt.s32.totalorder %v519_v1, 256  ;;  %vm2154_vm6 = vcmask 1042434  }
 0x69c   : > { %v1773_v20 = vmul.f32 %v3390_v22, %v1768_v34  ;;  %v1774_v11 = vmul.f32 %v3396_v16, %v1770_v3  ;;  %1815 = vmatprep.subr.bf16.mxu0 %v1648_v2 }
 0x69d   : > { %1816 = vmatpush1.bf16.msra.mxu0 %v1647_v46 }
 0x69e   : > { %v1775_v4 = vpack.c.bf16 %v1773_v20, %v1771_v24  ;;  %v1776_v5 = vpack.c.bf16 %v1774_v11, %v1772_v14 }
 0x6a0   : > { %1831 = vmatprep.subr.bf16.mxu0 %v1776_v5 }
 0x6a1   : > { %1832 = vmatpush2.bf16.msra.mxu0 %v1775_v4 }
 0x6a3   : > { %v1782_v53 = vpop.permute.xlu0 %1781 }
 0x6a4   : > { %1834 = vmatmul.mubr.bf16.vlgmr.msra.gmra.mxu0 %v2455_v0 }
 0x6a7   : > { %v1787_v45 = vpop.permute.xlu1 %1786 }
 0x764   : > { %v1835_v61 = vpop.f32.mrf.mxu0 }
 0x765   : > { %v1836_v15 = vadd.f32 %v1835_v61, %v1782_v53 }
 0x766   : > { %v1837_v26 = vpop.f32.mrf.mxu0 }
 0x767   : > { %v3671_v7 = vmax.f32 %v1836_v15, 0.0  ;;  %v1838_v21 = vadd.f32 %v1837_v26, %v1782_v53 }
 0x768   : > { %v1839_v35 = vpop.f32.mrf.mxu0 }
 0x769   : > { %v1840_v57 = vadd.f32 %v1839_v35, %v1787_v45  ;;  %1959 = vrot.lane.b32.xlu0 %v3671_v7, %s2482_s8  ;;  %v3677_v55 = vmax.f32 %v1838_v21, 0.0 }
 0x76a   : > { %v1841_v44 = vpop.f32.mrf.mxu0 }
 0x76b   : > { %v3675_v8 = vmax.f32 %v1840_v57, 0.0  ;;  %v1842_v51 = vadd.f32 %v1841_v44, %v1787_v45 }
 0x76d   : > { %v3679_v37 = vmax.f32 %v1842_v51, 0.0  ;;  %1961 = vrot.lane.b32.xlu1 %v3675_v8, %s2482_s8  ;;  %1941 = vrot.lane.b32.xlu0 %v3671_v7, %s2479_s18  ;;  %v1921_v47 = vpack.c.bf16 %v3675_v8, %v3671_v7 }
 0x76f   : > { %v1922_v23 = vpack.c.bf16 %v3679_v37, %v3677_v55 }
 0x771   : > { %1943 = vrot.lane.b32.xlu1 %v3675_v8, %s2479_s18  ;;  %1923 = vrot.lane.b32.xlu0 %v3671_v7, %s2478_s17 }
 0x775   : > { %1925 = vrot.lane.b32.xlu1 %v3675_v8, %s2478_s17  ;;  %1903 = vrot.lane.b32.xlu0 %v3671_v7, %s2477_s16 }
 0x779   : > { %1905 = vrot.lane.b32.xlu1 %v3675_v8, %s2477_s16  ;;  %1885 = vrot.lane.b32.xlu0 %v3671_v7, %s2474_s28 }
 0x77d   : > { %1887 = vrot.lane.b32.xlu1 %v3675_v8, %s2474_s28  ;;  %1867 = vrot.lane.b32.xlu0 %v3671_v7, %s3997_s22 }
 0x781   : > { %1869 = vrot.lane.b32.xlu1 %v3675_v8, %s3997_s22  ;;  %1849 = vrot.lane.b32.xlu0 %v3671_v7, %s3995_s30 }
 0x785   : > { %1851 = vrot.lane.b32.xlu1 %v3675_v8, %s3995_s30  ;;  %1963 = vrot.lane.b32.xlu0 %v3677_v55, %s2482_s8 }
 0x789   : > { %1965 = vrot.lane.b32.xlu1 %v3679_v37, %s2482_s8  ;;  %1945 = vrot.lane.b32.xlu0 %v3677_v55, %s2479_s18  ;;  %s2426_s8 = sshll.u32 %s4029_s21, 3 }
 0x78d   : > { %1947 = vrot.lane.b32.xlu1 %v3679_v37, %s2479_s18  ;;  %1927 = vrot.lane.b32.xlu0 %v3677_v55, %s2478_s17 }
 0x791   : > { %1929 = vrot.lane.b32.xlu1 %v3679_v37, %s2478_s17  ;;  %1977 = vrot.lane.b32.xlu0 %v3671_v7, %s3996_s19 }
 0x795   : > { %1979 = vrot.lane.b32.xlu1 %v3675_v8, %s3996_s19  ;;  %1907 = vrot.lane.b32.xlu0 %v3677_v55, %s2477_s16 }
 0x799   : > { %1909 = vrot.lane.b32.xlu1 %v3679_v37, %s2477_s16  ;;  %1889 = vrot.lane.b32.xlu0 %v3677_v55, %s2474_s28 }
 0x79d   : > { %1891 = vrot.lane.b32.xlu1 %v3679_v37, %s2474_s28  ;;  %1871 = vrot.lane.b32.xlu0 %v3677_v55, %s3997_s22 }
 0x7a1   : > { %1873 = vrot.lane.b32.xlu1 %v3679_v37, %s3997_s22  ;;  %1853 = vrot.lane.b32.xlu0 %v3677_v55, %s3995_s30  ;;  %s3910_s22 = scalar_lea.vmem %s3984_s15, %s2426_s8 }
 0x7a5   : > { %1855 = vrot.lane.b32.xlu1 %v3679_v37, %s3995_s30  ;;  %1981 = vrot.lane.b32.xlu0 %v3677_v55, %s3996_s19 }
 0x7a9   : > { %1983 = vrot.lane.b32.xlu1 %v3679_v37, %s3996_s19  ;;  %1998 = vperm.xlu0 %2446, %v1995_v9  }
 0x7db   : > { %v1960_v6 = vpop.permute.xlu0 %1959 }
 0x7df   : > { %v1962_v19 = vpop.permute.xlu1 %1961  ;;  %v1942_v41 = vpop.permute.xlu0 %1941 }
 0x7e3   : > { %v1944_v10 = vpop.permute.xlu1 %1943  ;;  %v1924_v25 = vpop.permute.xlu0 %1923 }
 0x7e7   : > { %v1926_v59 = vpop.permute.xlu1 %1925  ;;  %v1904_v17 = vpop.permute.xlu0 %1903 }
 0x7eb   : > { %v1906_v60 = vpop.permute.xlu1 %1905  ;;  %v3758_v12 = vpop.permute.xlu0 %1885 }
 0x7ef   : > { %v3760_v36 = vpop.permute.xlu1 %1887  ;;  %v3762_v58 = vpop.permute.xlu0 %1867 }
 0x7f3   : > { %v3764_v54 = vpop.permute.xlu1 %1869  ;;  %v3766_v56 = vpop.permute.xlu0 %1849 }
 0x7f7   : > { %v3768_v49 = vpop.permute.xlu1 %1851  ;;  %v1964_v46 = vpop.permute.xlu0 %1963 }
 0x7f8   : > { %v1967_v13 = vsel %vm667_vm10, %v1960_v6, %v1964_v46  ;;  %v1969_v2 = vsel %vm667_vm10, %v1964_v46, %v1960_v6 }
 0x7f9   : > { %v1971_v20 = vmul.f32 %v1967_v13, %v2774_v42  ;;  %v1972_v11 = vmul.f32 %v1969_v2, %v2777_v43 }
 0x7fb   : > { %v1966_v34 = vpop.permute.xlu1 %1965  ;;  %v1946_v3 = vpop.permute.xlu0 %1945 }
 0x7fc   : > { %v1968_v24 = vsel %vm667_vm10, %v1962_v19, %v1966_v34  ;;  %v1970_v14 = vsel %vm667_vm10, %v1966_v34, %v1962_v19  ;;  %v1949_v0 = vsel %vm648_vm8, %v1942_v41, %v1946_v3  ;;  %v1951_v53 = vsel %vm648_vm8, %v1946_v3, %v1942_v41 }
 0x7fd   : > { %v1973_v4 = vmul.f32 %v1968_v24, %v2774_v42  ;;  %v1974_v5 = vmul.f32 %v1970_v14, %v2777_v43  ;;  %v1953_v42 = vmul.f32 %v1949_v0, %v2752_v62  ;;  %v1954_v43 = vmul.f32 %v1951_v53, %v2755_v63 }
 0x7ff   : > { %v1975_v61 = vpack.c.bf16 %v1973_v4, %v1971_v20  ;;  %v1948_v15 = vpop.permute.xlu1 %1947  ;;  %v1928_v26 = vpop.permute.xlu0 %1927  ;;  %v1976_v45 = vpack.c.bf16 %v1974_v5, %v1972_v11 }
 0x800   : > { %v1950_v35 = vsel %vm648_vm8, %v1944_v10, %v1948_v15  ;;  %v1952_v21 = vsel %vm648_vm8, %v1948_v15, %v1944_v10  ;;  %v1931_v51 = vsel %vm629_vm5, %v1924_v25, %v1928_v26  ;;  %v1933_v48 = vsel %vm629_vm5, %v1928_v26, %v1924_v25  ;;  %vm4012_vm8 = vmmov %vm4002_vm7 }
 0x801   : > { %v1955_v57 = vmul.f32 %v1950_v35, %v2752_v62  ;;  %v1956_v44 = vmul.f32 %v1952_v21, %v2755_v63  ;;  %2014 = vmatprep.subr.bf16.mxu1 %v1976_v45  ;;  %v1935_v63 = vmul.f32 %v1931_v51, %v2734_v50  ;;  %v1936_v46 = vmul.f32 %v1933_v48, %v2739_v52 }
 0x802   : > { %2015 = vmatpush1.bf16.msra.mxu1 %v1975_v61 }
 0x803   : > { %v1957_v9 = vpack.c.bf16 %v1955_v57, %v1953_v42  ;;  %v1930_v6 = vpop.permute.xlu1 %1929  ;;  %v3798_v19 = vpop.permute.xlu0 %1977  ;;  %v1958_v41 = vpack.c.bf16 %v1956_v44, %v1954_v43 }
 0x804   : > { %v1932_v10 = vsel %vm629_vm5, %v1926_v59, %v1930_v6  ;;  %v1934_v62 = vsel %vm629_vm5, %v1930_v6, %v1926_v59  ;;  %vm4013_vm5 = vmmov %vm4002_vm7 }
 0x805   : > { %v1937_v13 = vmul.f32 %v1932_v10, %v2734_v50  ;;  %v1938_v25 = vmul.f32 %v1934_v62, %v2739_v52  ;;  %2016 = vmatprep.subr.bf16.mxu1 %v1958_v41  ;;  %vm4014_vm10 = vmmov %vm4013_vm5 }
 0x806   : > { %2017 = vmatpush1.bf16.msra.mxu1 %v1957_v9  ;;  %vm4015_vm14 = vmmov %vm4013_vm5 }
 0x807   : > { %v1939_v2 = vpack.c.bf16 %v1937_v13, %v1935_v63  ;;  %v3808_v34 = vpop.permute.xlu1 %1979  ;;  %v1908_v3 = vpop.permute.xlu0 %1907  ;;  %v1940_v24 = vpack.c.bf16 %v1938_v25, %v1936_v46  ;;  %vm4016_vm7 = vmmov %vm4006_vm9 }
 0x808   : > { %v1911_v14 = vsel %vm4012_vm8, %v1904_v17, %v1908_v3  ;;  %v1913_v59 = vsel %vm4013_vm5, %v1908_v3, %v1904_v17  ;;  %vm4017_vm12 = vmmov %vm4016_vm7  ;;  %vm2097_vm8 = vcmask 1041409   ;;  %vm2237_vm5 = vcmask 1043459  }
 0x809   : > { %2018 = vmatprep.subr.bf16.mxu1 %v1940_v24  ;;  %v1915_v4 = vmul.f32 %v1913_v59, %v2714_v39  ;;  %v1916_v5 = vmul.f32 %v1911_v14, %v2717_v40  ;;  %vm4021_vm9 = vmmov %vm4009_vm0 }
 0x80a   : > { %2019 = vmatpush1.bf16.msra.mxu1 %v1939_v2 }
 0x80b   : > { %v1910_v20 = vpop.permute.xlu1 %1909  ;;  %2020 = vmatprep.subr.bf16.mxu1 %v1922_v23  ;;  %v1890_v50 = vpop.permute.xlu0 %1889 }
 0x80c   : > { %v1912_v52 = vsel %vm4014_vm10, %v1906_v60, %v1910_v20  ;;  %v1914_v11 = vsel %vm4015_vm14, %v1910_v20, %v1906_v60  ;;  %v1893_v55 = vsel %vm589_vm1, %v3758_v12, %v1890_v50  ;;  %v1895_v37 = vsel %vm589_vm1, %v1890_v50, %v3758_v12 }
 0x80d   : > { %v1917_v0 = vmul.f32 %v1914_v11, %v2714_v39  ;;  %v1918_v17 = vmul.f32 %v1912_v52, %v2717_v40  ;;  %v1897_v15 = vmul.f32 %v1895_v37, %v2682_v27  ;;  %v1898_v12 = vmul.f32 %v1893_v55, %v2685_v28 }
 0x80e   : > { %2021 = vmatpush1.bf16.msra.mxu1 %v1921_v47 }
 0x80f   : > { %v1919_v23 = vpack.c.bf16 %v1917_v0, %v1915_v4  ;;  %v1892_v60 = vpop.permute.xlu1 %1891  ;;  %v1872_v53 = vpop.permute.xlu0 %1871  ;;  %v1920_v61 = vpack.c.bf16 %v1918_v17, %v1916_v5 }
 0x810   : > { %v1894_v39 = vsel %vm589_vm1, %v3760_v36, %v1892_v60  ;;  %v1896_v40 = vsel %vm589_vm1, %v1892_v60, %v3760_v36  ;;  %v1875_v8 = vsel %vm4016_vm7, %v3762_v58, %v1872_v53  ;;  %v1877_v47 = vsel %vm4017_vm12, %v1872_v53, %v3762_v58  ;;  %vm4018_vm1 = vmmov %vm4016_vm7 }
 0x811   : > { %v1899_v26 = vmul.f32 %v1896_v40, %v2682_v27  ;;  %v1900_v7 = vmul.f32 %v1894_v39, %v2685_v28  ;;  %2022 = vmatprep.subr.bf16.mxu1 %v1920_v61  ;;  %vm4019_vm13 = vmmov %vm4018_vm1  ;;  %v1879_v42 = vmul.f32 %v1877_v47, %v2689_v29  ;;  %v1880_v43 = vmul.f32 %v1875_v8, %v2693_v30 }
 0x812   : > { %2023 = vmatpush1.bf16.msra.mxu1 %v1919_v23 }
 0x813   : > { %v1901_v45 = vpack.c.bf16 %v1899_v26, %v1897_v15  ;;  %v1874_v36 = vpop.permute.xlu1 %1873  ;;  %v1854_v35 = vpop.permute.xlu0 %1853  ;;  %v1902_v21 = vpack.c.bf16 %v1900_v7, %v1898_v12 }
 0x814   : > { %v1876_v27 = vsel %vm4018_vm1, %v3764_v54, %v1874_v36  ;;  %v1878_v28 = vsel %vm4019_vm13, %v1874_v36, %v3764_v54  ;;  %v1857_v44 = vsel %vm551_vm3, %v3766_v56, %v1854_v35  ;;  %v1859_v51 = vsel %vm551_vm3, %v1854_v35, %v3766_v56 }
 0x815   : > { %v1881_v57 = vmul.f32 %v1878_v28, %v2689_v29  ;;  %v1882_v58 = vmul.f32 %v1876_v27, %v2693_v30  ;;  %2024 = vmatprep.subr.bf16.mxu1 %v1902_v21  ;;  %v1861_v41 = vmul.f32 %v1859_v51, %v2697_v31  ;;  %v1862_v10 = vmul.f32 %v1857_v44, %v2701_v32 }
 0x816   : > { %2025 = vmatpush1.bf16.msra.mxu1 %v1901_v45 }
 0x817   : > { %v1883_v48 = vpack.c.bf16 %v1881_v57, %v1879_v42  ;;  %v1856_v54 = vpop.permute.xlu1 %1855  ;;  %v1982_v9 = vpop.permute.xlu0 %1981  ;;  %v1884_v6 = vpack.c.bf16 %v1882_v58, %v1880_v43 }
 0x818   : > { %v1858_v29 = vsel %vm551_vm3, %v3768_v49, %v1856_v54  ;;  %v1860_v30 = vsel %vm551_vm3, %v1856_v54, %v3768_v49  ;;  %v1985_v63 = vsel %vm4020_vm15, %v3798_v19, %v1982_v9  ;;  %v1987_v46 = vsel %vm4021_vm9, %v1982_v9, %v3798_v19  ;;  %vm4022_vm3 = vmmov %vm4009_vm0 }
 0x819   : > { %v1863_v62 = vmul.f32 %v1860_v30, %v2697_v31  ;;  %v1864_v56 = vmul.f32 %v1858_v29, %v2701_v32  ;;  %2026 = vmatprep.subr.bf16.mxu1 %v1884_v6  ;;  %v1989_v32 = vmul.f32 %v3390_v22, %v1985_v63  ;;  %v1990_v3 = vmul.f32 %v3396_v16, %v1987_v46  ;;  %vm4025_vm0 = vmmov %vm4024_vm2 }
 0x81a   : > { %2027 = vmatpush1.bf16.msra.mxu1 %v1883_v48 }
 0x81b   : > { %v1865_v13 = vpack.c.bf16 %v1863_v62, %v1861_v41  ;;  %v1984_v49 = vpop.permute.xlu1 %1983  ;;  %v1866_v25 = vpack.c.bf16 %v1864_v56, %v1862_v10 }
 0x81c   : > { %v1986_v2 = vsel %vm4022_vm3, %v3808_v34, %v1984_v49  ;;  %v1988_v31 = vsel %vm4023_vm11, %v1984_v49, %v3808_v34 }
 0x81d   : > { %v1991_v24 = vmul.f32 %v3390_v22, %v1986_v2  ;;  %v1992_v19 = vmul.f32 %v3396_v16, %v1988_v31  ;;  %2028 = vmatprep.subr.bf16.mxu1 %v1866_v25 }
 0x81e   : > { %2029 = vmatpush1.bf16.msra.mxu1 %v1865_v13 }
 0x81f   : > { %v1993_v14 = vpack.c.bf16 %v1991_v24, %v1989_v32  ;;  %v1994_v59 = vpack.c.bf16 %v1992_v19, %v1990_v3 }
 0x821   : > { %2044 = vmatprep.subr.bf16.mxu1 %v1994_v59 }
 0x822   : > { %2045 = vmatpush2.bf16.msra.mxu1 %v1993_v14 }
 0x824   : > { %v1999_v20 = vpop.permute.xlu0 %1998 }
 0x825   : > { %2047 = vmatmul.mubr.bf16.vlgmr.msra.gmra.mxu1 %v3744_v38 }
 0x8e5   : > { %v2048_v18 = vpop.f32.mrf.mxu1 }
 0x8e6   : > { %v3893_v34 = vadd.f32 %v2048_v18, %v1999_v20 }
 0x8e7   : > { %v2050_v50 = vpop.f32.mrf.mxu1 }
 0x8e8   : > { %v3895_v52 = vadd.f32 %v2050_v50, %v1999_v20  ;;  %v2078_v22 = vmul.f32 %v3893_v34, %v3893_v34 }
 0x8e9   : > { %v2052_v16 = vpop.f32.mrf.mxu1 }
 0x8ea   : > { %v2079_v11 = vmul.f32 %v3895_v52, %v3895_v52  ;;  %v2057_v4 = vcombine.low %v3893_v34, %v3895_v52  ;;  %v2080_v38 = vsel %vm4024_vm2, %v2078_v22, 0.0 }
 0x8eb   : > { %v2053_v5 = vpop.f32.mrf.mxu1 }
 0x8ec   : > { %v2081_v0 = vsel %vm4025_vm0, %v2079_v11, 0.0  ;;  %v2064_v17 = vrot.slane %v2057_v4, %v3122_v33 }
 0x8ed   : > { %v2082_v55 = vadd.f32 %v2081_v0, %v2080_v38 }
 0x8ee   : > { %v2071_v23 = vrot.slane %v2064_v17, %v3122_v33 }
 0x8ef   : > { %2083 = vadd.xlane.f32.xlu1 %v2082_v55 }
 0x8f0   : > { %2077 = vst.msk [vmem:[%s3910_s22] ss:$4 sm:$0x3] %vm3913_vm4, %v2071_v23 }
 0x978   : > { %v2084_v60 = vpop.xlane.xlu1 %2083 }
 0x979   : > { %v2085_v53 = vadd.f32 1e-12, %v2084_v60 }
 0x97b   : > { %2456 = vrsqrt.f32 %v2085_v53 }
 0x988   : > { %v2457_v61 = vpop.eup %2456 }
 0x989   : > { %v2087_v39 = vmul.f32 %v2457_v61, %v3893_v34  ;;  %v2088_v40 = vmul.f32 %v2457_v61, %v3895_v52 }
 0x98b   : > { %v2148_v15 = vrot.slane %v2087_v39, 6  ;;  %v2149_v12 = vrot.slane %v2088_v40, 6  ;;  %v2091_v1 = vrot.slane %v2087_v39, 7  ;;  %v2092_v26 = vrot.slane %v2088_v40, 7 }
 0x98c   : > { %v2231_v7 = vrot.slane %v2087_v39, 5  ;;  %v2232_v8 = vrot.slane %v2088_v40, 5 }
 0x98d   : > { %v2152_v47 = vmul.f32 %v2148_v15, %v3893_v34  ;;  %v2153_v45 = vmul.f32 %v2149_v12, %v3895_v52  ;;  %v2095_v36 = vmul.f32 %v2091_v1, %v3893_v34  ;;  %v2096_v35 = vmul.f32 %v2092_v26, %v3895_v52 }
 0x98e   : > { %v2235_v21 = vmul.f32 %v2231_v7, %v3893_v34  ;;  %v2236_v27 = vmul.f32 %v2232_v8, %v3895_v52 }
 0x98f   : > { %v2155_v28 = vsel %vm2154_vm6, %v2152_v47, 0.0  ;;  %v2156_v42 = vsel %vm2154_vm6, %v2153_v45, 0.0  ;;  %v2098_v43 = vsel %vm2097_vm8, %v2095_v36, 0.0  ;;  %v2099_v57 = vsel %vm2097_vm8, %v2096_v35, 0.0 }
 0x990   : > { %v2157_v58 = vadd.f32 %v2156_v42, %v2155_v28  ;;  %v2100_v44 = vadd.f32 %v2099_v57, %v2098_v43  ;;  %v2238_v51 = vsel %vm2237_vm5, %v2235_v21, 0.0  ;;  %v2239_v48 = vsel %vm2237_vm5, %v2236_v27, 0.0 }
 0x991   : > { %v2240_v54 = vadd.f32 %v2239_v48, %v2238_v51 }
 0x992   : > { %2158 = vadd.xlane.f32.xlu1 %v2157_v58  ;;  %2101 = vadd.xlane.f32.xlu0 %v2100_v44 }
 0x996   : > { %2241 = vadd.xlane.f32.xlu1 %v2240_v54 }
 0xa1b   : > { %v2102_v9 = vpop.xlane.xlu0 %2101  ;;  %v2159_v24 = vpop.xlane.xlu1 %2158 }
 0xa1c   : > { %v2104_v6 = vrot.slane %v2102_v9, 1  ;;  %v2161_v20 = vrot.slane %v2159_v24, 2 }
 0xa1e   : > { %v2106_v29 = vmul.f32 %v2104_v6, %v2087_v39  ;;  %v2107_v30 = vmul.f32 %v2104_v6, %v2088_v40  ;;  %v2163_v50 = vmul.f32 %v2161_v20, %v2087_v39  ;;  %v2164_v22 = vmul.f32 %v2161_v20, %v2088_v40 }
 0xa1f   : > { %v2242_v59 = vpop.xlane.xlu1 %2241 }
 0xa20   : > { %v2110_v41 = vrot.slane %v2106_v29, 7  ;;  %v2111_v10 = vrot.slane %v2107_v30, 7  ;;  %v2244_v18 = vrot.slane %v2242_v59, 3  ;;  %v2167_v4 = vrot.slane %v2163_v50, 6 }
 0xa21   : > { %v2168_v5 = vrot.slane %v2164_v22, 6 }
 0xa22   : > { %v2114_v62 = vsub.f32 %v3893_v34, %v2110_v41  ;;  %v2115_v56 = vsub.f32 %v3895_v52, %v2111_v10  ;;  %v2246_v16 = vmul.f32 %v2244_v18, %v2087_v39  ;;  %v2247_v11 = vmul.f32 %v2244_v18, %v2088_v40 }
 0xa23   : > { %v2171_v60 = vsub.f32 %v3893_v34, %v2167_v4  ;;  %v2172_v53 = vsub.f32 %v3895_v52, %v2168_v5 }
 0xa24   : > { %v2118_v63 = vcombine.low %v2114_v62, %v2115_v56  ;;  %v2137_v46 = vmul.f32 %v2114_v62, %v2114_v62  ;;  %v2138_v13 = vmul.f32 %v2115_v56, %v2115_v56  ;;  %v2250_v38 = vrot.slane %v2246_v16, 5 }
 0xa25   : > { %v2251_v0 = vrot.slane %v2247_v11, 5 }
 0xa26   : > { %v2125_v49 = vrot.slane %v2118_v63, %v3122_v33  ;;  %v2139_v25 = vsel %vm2097_vm8, %v2137_v46, 0.0  ;;  %v2140_v2 = vsel %vm2097_vm8, %v2138_v13, 0.0  ;;  %v2254_v61 = vsub.f32 %v3893_v34, %v2250_v38 }
 0xa27   : > { %v2141_v31 = vadd.f32 %v2140_v2, %v2139_v25  ;;  %v2255_v15 = vsub.f32 %v3895_v52, %v2251_v0 }
 0xa28   : > { %v2126_v32 = vcombine.high %v2125_v49, %v2125_v49 }
 0xa29   : > { %2142 = vadd.xlane.f32.xlu0 %v2141_v31 }
 0xa2a   : > { %v2133_v3 = vrot.slane %v2126_v32, %v3122_v33 }
 0xa2c   : > { %2421 = vst.msk [vmem:[%s3910_s22 + $0x1] ss:$4 sm:$0x3] %vm3913_vm4, %v2133_v3 }
 0xab2   : > { %v2143_v19 = vpop.xlane.xlu0 %2142 }
 0xab3   : > { %v2144_v14 = vadd.f32 1e-12, %v2143_v19 }
 0xab5   : > { %2458 = vrsqrt.f32 %v2144_v14 }
 0xac2   : > { %v2459_v17 = vpop.eup %2458 }
 0xac3   : > { %v2146_v55 = vmul.f32 %v2459_v17, %v2114_v62  ;;  %v2147_v23 = vmul.f32 %v2459_v17, %v2115_v56 }
 0xac5   : > { %v2256_v12 = vrot.slane %v2146_v55, 6  ;;  %v2257_v1 = vrot.slane %v2147_v23, 6  ;;  %v2175_v26 = vrot.slane %v2146_v55, 7  ;;  %v2176_v39 = vrot.slane %v2147_v23, 7 }
 0xac7   : > { %v2260_v40 = vmul.f32 %v2256_v12, %v2254_v61  ;;  %v2261_v7 = vmul.f32 %v2257_v1, %v2255_v15  ;;  %v2179_v8 = vmul.f32 %v2175_v26, %v2171_v60  ;;  %v2180_v47 = vmul.f32 %v2176_v39, %v2172_v53 }
 0xac9   : > { %v2262_v45 = vsel %vm2237_vm5, %v2260_v40, 0.0  ;;  %v2263_v36 = vsel %vm2237_vm5, %v2261_v7, 0.0  ;;  %v2181_v35 = vsel %vm2154_vm6, %v2179_v8, 0.0  ;;  %v2182_v21 = vsel %vm2154_vm6, %v2180_v47, 0.0 }
 0xaca   : > { %v2264_v27 = vadd.f32 %v2263_v36, %v2262_v45  ;;  %v2183_v34 = vadd.f32 %v2182_v21, %v2181_v35 }
 0xacc   : > { %2265 = vadd.xlane.f32.xlu1 %v2264_v27  ;;  %2184 = vadd.xlane.f32.xlu0 %v2183_v34 }
 0xb55   : > { %v2185_v52 = vpop.xlane.xlu0 %2184  ;;  %v2266_v46 = vpop.xlane.xlu1 %2265 }
 0xb56   : > { %v2187_v28 = vrot.slane %v2185_v52, 1  ;;  %v2268_v13 = vrot.slane %v2266_v46, 2 }
 0xb58   : > { %v2189_v42 = vmul.f32 %v2187_v28, %v2146_v55  ;;  %v2190_v43 = vmul.f32 %v2187_v28, %v2147_v23  ;;  %v2270_v49 = vmul.f32 %v2268_v13, %v2146_v55  ;;  %v2271_v25 = vmul.f32 %v2268_v13, %v2147_v23 }
 0xb5a   : > { %v2193_v57 = vrot.slane %v2189_v42, 7  ;;  %v2194_v58 = vrot.slane %v2190_v43, 7  ;;  %v2274_v2 = vrot.slane %v2270_v49, 6  ;;  %v2275_v31 = vrot.slane %v2271_v25, 6 }
 0xb5c   : > { %v2197_v44 = vsub.f32 %v2171_v60, %v2193_v57  ;;  %v2198_v51 = vsub.f32 %v2172_v53, %v2194_v58  ;;  %v2278_v19 = vsub.f32 %v2254_v61, %v2274_v2  ;;  %v2279_v14 = vsub.f32 %v2255_v15, %v2275_v31 }
 0xb5e   : > { %v2201_v48 = vcombine.low %v2197_v44, %v2198_v51  ;;  %v2220_v54 = vmul.f32 %v2197_v44, %v2197_v44  ;;  %v2221_v9 = vmul.f32 %v2198_v51, %v2198_v51 }
 0xb60   : > { %v2208_v6 = vrot.slane %v2201_v48, %v3122_v33  ;;  %v2222_v29 = vsel %vm2154_vm6, %v2220_v54, 0.0  ;;  %v2223_v30 = vsel %vm2154_vm6, %v2221_v9, 0.0 }
 0xb61   : > { %v2224_v41 = vadd.f32 %v2223_v30, %v2222_v29 }
 0xb62   : > { %v2215_v10 = vrot.slane %v2208_v6, %v3122_v33 }
 0xb63   : > { %2225 = vadd.xlane.f32.xlu0 %v2224_v41 }
 0xb64   : > { %v2216_v62 = vcombine.high %v2215_v10, %v2215_v10 }
 0xb66   : > { %2422 = vst.msk [vmem:[%s3910_s22 + $0x2] ss:$4 sm:$0x3] %vm3913_vm4, %v2216_v62 }
 0xbec   : > { %v2226_v56 = vpop.xlane.xlu0 %2225 }
 0xbed   : > { %v2227_v63 = vadd.f32 1e-12, %v2226_v56 }
 0xbef   : > { %2460 = vrsqrt.f32 %v2227_v63 }
 0xbfc   : > { %v2461_v32 = vpop.eup %2460 }
 0xbfd   : > { %v2229_v3 = vmul.f32 %v2461_v32, %v2197_v44  ;;  %v2230_v24 = vmul.f32 %v2461_v32, %v2198_v51 }
 0xbff   : > { %v2282_v59 = vrot.slane %v2229_v3, 7  ;;  %v2283_v20 = vrot.slane %v2230_v24, 7 }
 0xc01   : > { %v2286_v18 = vmul.f32 %v2282_v59, %v2278_v19  ;;  %v2287_v50 = vmul.f32 %v2283_v20, %v2279_v14 }
 0xc03   : > { %v2288_v22 = vsel %vm2237_vm5, %v2286_v18, 0.0  ;;  %v2289_v16 = vsel %vm2237_vm5, %v2287_v50, 0.0 }
 0xc04   : > { %v2290_v11 = vadd.f32 %v2289_v16, %v2288_v22 }
 0xc06   : > { %2291 = vadd.xlane.f32.xlu0 %v2290_v11 }
 0xc8f   : > { %v2292_v4 = vpop.xlane.xlu0 %2291 }
 0xc90   : > { %v2294_v5 = vrot.slane %v2292_v4, 1 }
 0xc92   : > { %v2296_v38 = vmul.f32 %v2294_v5, %v2229_v3  ;;  %v2297_v0 = vmul.f32 %v2294_v5, %v2230_v24 }
 0xc94   : > { %v2300_v17 = vrot.slane %v2296_v38, 7  ;;  %v2301_v55 = vrot.slane %v2297_v0, 7 }
 0xc96   : > { %v2304_v23 = vsub.f32 %v2278_v19, %v2300_v17  ;;  %v2305_v60 = vsub.f32 %v2279_v14, %v2301_v55 }
 0xc98   : > { %v2308_v53 = vcombine.low %v2304_v23, %v2305_v60 }
 0xc9a   : > { %v2315_v61 = vrot.slane %v2308_v53, %v3122_v33 }
 0xc9c   : > { %v2316_v15 = vcombine.high %v2315_v61, %v2315_v61 }
 0xc9e   : > { %v2323_v12 = vrot.slane %v2316_v15, %v3122_v33 }
 0xca0   : > { %v2324_v1 = vcombine.high %v2323_v12, %v2323_v12 }
 0xca2   : > { %2423 = vst.msk [vmem:[%s3910_s22 + $0x3] ss:$4 sm:$0x3] %vm3913_vm4, %v2324_v1 }
 0xca3 PF: > { %s27_s20 = sadd.s32 1, %s2472_s20  }
 0xca4   : > { %p24_p4 = scmp.ge.s32.totalorder %s27_s20, 4  }
 0xca6   :  { %26 = sbr.rel (!%p24_p4) target bundleno = 3 (0x3), region = 116 }

</bundles_post_ra>
